<compile_context>
chip_gen: v7x
topology: tpu7x:2x2x1
jax: 0.10.0
libtpu: 0.0.40
codegen_flags: <defaults>
</compile_context>

<pallas_src>
import functools

import numpy as np
import jax
import jax.numpy as jnp
from jax.experimental import pallas as pl
from jax.experimental.pallas import tpu as pltpu  # noqa: F401  (TPU backend)

# ----------------------------- model config (small) --------------------------
CLASS_DIM = 8
POSE_DIM = 24
D_MODEL = 32          # == d_word_vec
D_INNER = 64
N_LAYERS = 2
N_HEAD = 4
D_K = 8
D_V = 8
N_POSITION = 8        # sequence length T must equal n_position (post_projector flatten)
BATCH = 2
LN_EPS = 1e-6
NEG_INF = -1e30
LOGIT_PAD = 128       # lane-dense classifier slab width


# ----------------------------- helpers ---------------------------------------
def _layer_norm(y, g, b, eps=LN_EPS):
    mean = jnp.mean(y, axis=-1, keepdims=True)
    var = jnp.mean((y - mean) ** 2, axis=-1, keepdims=True)
    return (y - mean) * jax.lax.rsqrt(var + eps) * g + b


# ----------------------------- fused Pallas kernel ----------------------------
def fused_forward_kernel(*refs, n_layers, n_head, seq_len, batch):
    it = iter(refs)
    x_ref = next(it)
    pe1_w, pe1_b, pe2_w, pe2_b = next(it), next(it), next(it), next(it)
    pos_ref = next(it)
    mask_ref = next(it)
    layers = [tuple(next(it) for _ in range(12)) for _ in range(n_layers)]
    post = [(next(it), next(it)) for _ in range(5)]
    mid_ref = next(it)
    logits_ref = next(it)

    n_rows = batch * seq_len
    d_model = pe1_w.shape[1]

    # ---- Prior_Encoder: fc1 -> (dropout id) -> fc2 ----
    x = jnp.dot(x_ref[...], pe1_w[...], preferred_element_type=jnp.float32) + pe1_b[...]
    x = jnp.dot(x, pe2_w[...], preferred_element_type=jnp.float32) + pe2_b[...]

    # ---- positional encoding (pre-tiled to (B*T, D)); dropout = identity ----
    x = x + pos_ref[...]

    mask = mask_ref[...]                 # (B*T, B*T): 0 same-sequence, -1e30 cross-sequence

    for (wq, wk, wv, wo, ln1_g, ln1_b, w1, fb1, w2, fb2, ln2_g, ln2_b) in layers:
        # ---- head-batched self-attention over the folded (B*T) axis ----
        # (1/sqrt(d_k) is pre-folded into wq on the host.)
        xh = jnp.broadcast_to(x[None], (n_head, n_rows, d_model))
        q = jnp.einsum("hnd,hdk->hnk", xh, wq[...], preferred_element_type=jnp.float32)
        k = jnp.einsum("hnd,hdk->hnk", xh, wk[...], preferred_element_type=jnp.float32)
        v = jnp.einsum("hnd,hde->hne", xh, wv[...], preferred_element_type=jnp.float32)

        s = jnp.einsum("hqd,hkd->hqk", q, k, preferred_element_type=jnp.float32)
        s = s + mask                     # block-diagonal mask: no cross-sequence attention
        s = s - jnp.max(s, axis=-1, keepdims=True)
        p = jnp.exp(s)
        p = p * pl.reciprocal(jnp.sum(p, axis=-1, keepdims=True), approx=True)

        o = jnp.einsum("hqk,hke->hqe", p, v, preferred_element_type=jnp.float32)
        o = jnp.einsum("hne,hed->hnd", o, wo[...], preferred_element_type=jnp.float32)
        o = jnp.sum(o, axis=0)           # sum over heads == concat(heads) @ Wo
        x = _layer_norm(o + x, ln1_g[...], ln1_b[...])

        # ---- position-wise feed-forward ----
        h = jnp.dot(x, w1[...], preferred_element_type=jnp.float32) + fb1[...]
        h = jnp.maximum(h, 0.0)
        y = jnp.dot(h, w2[...], preferred_element_type=jnp.float32) + fb2[...]
        x = _layer_norm(y + x, ln2_g[...], ln2_b[...])

    # ---- flatten to (B, T*D) row-major (== torch .reshape(B, -1)) ----
    steps = []
    for t in range(seq_len):
        rows = [x[b * seq_len + t: b * seq_len + t + 1, :] for b in range(batch)]
        steps.append(jnp.concatenate(rows, axis=0) if batch > 1 else rows[0])
    flat = jnp.concatenate(steps, axis=-1)       # (B, T*D) lane-dense slab
    mid_ref[...] = flat

    # ---- post_projector: 5 linears, ReLU after the first 4 ----
    h = flat
    for i, (w, bias) in enumerate(post):
        h = jnp.dot(h, w[...], preferred_element_type=jnp.float32) + bias[...]
        if i < len(post) - 1:
            h = jnp.maximum(h, 0.0)
    logits_ref[...] = h                          # (B, 128), zero beyond CLASS_DIM


# ----------------------------- wrapper ----------------------------------------
@jax.jit
def transformer_forward(params, prior_seq):
    b, t, d_in = prior_seq.shape
    x = prior_seq.reshape(b * t, d_in)

    args = [x,
            params["pe_fc1_w"], params["pe_fc1_b"],
            params["pe_fc2_w"], params["pe_fc2_b"],
            params["pos_bt"], params["attn_mask"]]
    for layer in params["layers"]:
        args += [layer["wq_h"], layer["wk_h"], layer["wv_h"], layer["wo_h"],
                 layer["attn_ln_g"], layer["attn_ln_b"],
                 layer["w1"], layer["b1"], layer["w2"], layer["b2"],
                 layer["ffn_ln_g"], layer["ffn_ln_b"]]
    for w, bias in params["post"]:
        args += [w, bias]

    kern = functools.partial(
        fused_forward_kernel,
        n_layers=len(params["layers"]), n_head=N_HEAD,
        seq_len=t, batch=b)

    mid_flat, logits_pad = pl.pallas_call(
        kern,
        out_shape=(jax.ShapeDtypeStruct((b, t * D_MODEL), jnp.float32),
                   jax.ShapeDtypeStruct((b, LOGIT_PAD), jnp.float32)),
    )(*args)

    dec_output = logits_pad[:, :CLASS_DIM]
    mid_feature = mid_flat.reshape(b, t, D_MODEL)
    return dec_output, mid_feature


# ----------------------------- parameters -------------------------------------
def _xavier(key, fan_in, fan_out):
    # weight already transposed to (in, out) for y = x @ W
    bound = float(np.sqrt(6.0 / (fan_in + fan_out)))
    return jax.random.uniform(key, (fan_in, fan_out), jnp.float32, -bound, bound)


def _sinusoid_table(n_position, d_hid):
    def angle_vec(pos):
        return [pos / np.power(10000, 2 * (j // 2) / d_hid) for j in range(d_hid)]
    tbl = np.array([angle_vec(p) for p in range(n_position)], dtype=np.float64)
    tbl[:, 0::2] = np.sin(tbl[:, 0::2])
    tbl[:, 1::2] = np.cos(tbl[:, 1::2])
    return tbl.astype(np.float32)                       # (n_position, d_hid)


def _block_diag_bias(batch, seq_len):
    n = batch * seq_len
    row = np.arange(n)[:, None] // seq_len
    col = np.arange(n)[None, :] // seq_len
    return np.where(row == col, 0.0, NEG_INF).astype(np.float32)


def init_params(key, batch=BATCH):
    keys = jax.random.split(key, 64)
    ki = iter(range(64))
    params = {
        # Prior_Encoder
        "pe_fc1_w": _xavier(keys[next(ki)], POSE_DIM, D_MODEL),
        "pe_fc1_b": jnp.zeros((1, D_MODEL), jnp.float32),
        "pe_fc2_w": _xavier(keys[next(ki)], D_MODEL, D_MODEL),
        "pe_fc2_b": jnp.zeros((1, D_MODEL), jnp.float32),
        # positional table pre-tiled to (B*T, D); block-diagonal attention mask
        "pos_bt": jnp.asarray(np.tile(_sinusoid_table(N_POSITION, D_MODEL), (batch, 1))),
        "attn_mask": jnp.asarray(_block_diag_bias(batch, N_POSITION)),
    }
    inv_temp = 1.0 / float(D_K) ** 0.5
    layers = []
    for _ in range(N_LAYERS):
        wq = _xavier(keys[next(ki)], D_MODEL, N_HEAD * D_K)
        wk = _xavier(keys[next(ki)], D_MODEL, N_HEAD * D_K)
        wv = _xavier(keys[next(ki)], D_MODEL, N_HEAD * D_V)
        wo = _xavier(keys[next(ki)], N_HEAD * D_V, D_MODEL)
        layers.append({
            # per-head stacked layouts so attention is one batched dot per tensor;
            # attention temperature 1/sqrt(d_k) folded into wq here (host-side).
            "wq_h": (wq * inv_temp).reshape(D_MODEL, N_HEAD, D_K).transpose(1, 0, 2),  # (H, D, d_k)
            "wk_h": wk.reshape(D_MODEL, N_HEAD, D_K).transpose(1, 0, 2),               # (H, D, d_k)
            "wv_h": wv.reshape(D_MODEL, N_HEAD, D_V).transpose(1, 0, 2),               # (H, D, d_v)
            "wo_h": wo.reshape(N_HEAD, D_V, D_MODEL),                                  # (H, d_v, D)
            "attn_ln_g": jnp.ones((1, D_MODEL), jnp.float32),
            "attn_ln_b": jnp.zeros((1, D_MODEL), jnp.float32),
            "w1": _xavier(keys[next(ki)], D_MODEL, D_INNER),
            "b1": jnp.zeros((1, D_INNER), jnp.float32),
            "w2": _xavier(keys[next(ki)], D_INNER, D_MODEL),
            "b2": jnp.zeros((1, D_MODEL), jnp.float32),
            "ffn_ln_g": jnp.ones((1, D_MODEL), jnp.float32),
            "ffn_ln_b": jnp.zeros((1, D_MODEL), jnp.float32),
        })
    params["layers"] = layers

    # post_projector: 5 linears, ReLU after the first 4
    dims = [N_POSITION * D_MODEL, D_MODEL * 4, D_MODEL, 128, 64, CLASS_DIM]
    post = []
    for i in range(5):
        w = _xavier(keys[next(ki)], dims[i], dims[i + 1])
        bias = jnp.zeros((1, dims[i + 1]), jnp.float32)
        if i == 4:
            # lane-dense classifier head: zero-pad output features to 128 lanes
            w = jnp.pad(w, ((0, 0), (0, LOGIT_PAD - dims[i + 1])))
            bias = jnp.pad(bias, ((0, 0), (0, LOGIT_PAD - dims[i + 1])))
        post.append((w, bias))
    params["post"] = post
    return params


# ----------------------------- main --------------------------------------------
if __name__ == "__main__":
    key = jax.random.PRNGKey(0)
    pkey, xkey = jax.random.split(key)
    params = init_params(pkey, batch=BATCH)
    prior_seq = jax.random.normal(xkey, (BATCH, N_POSITION, POSE_DIM), jnp.float32)

    dec_output, mid_feature = transformer_forward(params, prior_seq)
    jax.block_until_ready((dec_output, mid_feature))

    assert dec_output.shape == (BATCH, CLASS_DIM)
    assert mid_feature.shape == (BATCH, N_POSITION, D_MODEL)
    assert bool(jnp.all(jnp.isfinite(dec_output)))
    assert bool(jnp.all(jnp.isfinite(mid_feature)))
    print("KERNEL_OK")
</pallas_src>

<mosaic_0001>
module attributes {stable_mosaic.version = 11 : i64} {
  func.func @fused_forward_kernel(%arg0: memref<16x24xf32, #tpu.memory_space<vmem>>, %arg1: memref<24x32xf32, #tpu.memory_space<vmem>>, %arg2: memref<1x32xf32, #tpu.memory_space<vmem>>, %arg3: memref<32x32xf32, #tpu.memory_space<vmem>>, %arg4: memref<1x32xf32, #tpu.memory_space<vmem>>, %arg5: memref<16x32xf32, #tpu.memory_space<vmem>>, %arg6: memref<16x16xf32, #tpu.memory_space<vmem>>, %arg7: memref<4x32x8xf32, #tpu.memory_space<vmem>>, %arg8: memref<4x32x8xf32, #tpu.memory_space<vmem>>, %arg9: memref<4x32x8xf32, #tpu.memory_space<vmem>>, %arg10: memref<4x8x32xf32, #tpu.memory_space<vmem>>, %arg11: memref<1x32xf32, #tpu.memory_space<vmem>>, %arg12: memref<1x32xf32, #tpu.memory_space<vmem>>, %arg13: memref<32x64xf32, #tpu.memory_space<vmem>>, %arg14: memref<1x64xf32, #tpu.memory_space<vmem>>, %arg15: memref<64x32xf32, #tpu.memory_space<vmem>>, %arg16: memref<1x32xf32, #tpu.memory_space<vmem>>, %arg17: memref<1x32xf32, #tpu.memory_space<vmem>>, %arg18: memref<1x32xf32, #tpu.memory_space<vmem>>, %arg19: memref<4x32x8xf32, #tpu.memory_space<vmem>>, %arg20: memref<4x32x8xf32, #tpu.memory_space<vmem>>, %arg21: memref<4x32x8xf32, #tpu.memory_space<vmem>>, %arg22: memref<4x8x32xf32, #tpu.memory_space<vmem>>, %arg23: memref<1x32xf32, #tpu.memory_space<vmem>>, %arg24: memref<1x32xf32, #tpu.memory_space<vmem>>, %arg25: memref<32x64xf32, #tpu.memory_space<vmem>>, %arg26: memref<1x64xf32, #tpu.memory_space<vmem>>, %arg27: memref<64x32xf32, #tpu.memory_space<vmem>>, %arg28: memref<1x32xf32, #tpu.memory_space<vmem>>, %arg29: memref<1x32xf32, #tpu.memory_space<vmem>>, %arg30: memref<1x32xf32, #tpu.memory_space<vmem>>, %arg31: memref<256x128xf32, #tpu.memory_space<vmem>>, %arg32: memref<1x128xf32, #tpu.memory_space<vmem>>, %arg33: memref<128x32xf32, #tpu.memory_space<vmem>>, %arg34: memref<1x32xf32, #tpu.memory_space<vmem>>, %arg35: memref<32x128xf32, #tpu.memory_space<vmem>>, %arg36: memref<1x128xf32, #tpu.memory_space<vmem>>, %arg37: memref<128x64xf32, #tpu.memory_space<vmem>>, %arg38: memref<1x64xf32, #tpu.memory_space<vmem>>, %arg39: memref<64x128xf32, #tpu.memory_space<vmem>>, %arg40: memref<1x128xf32, #tpu.memory_space<vmem>>, %arg41: memref<2x256xf32, #tpu.memory_space<vmem>>, %arg42: memref<2x128xf32, #tpu.memory_space<vmem>>) attributes {dimension_semantics = [], scalar_prefetch = 0 : i64, scratch_operands = 0 : i64, tpu.core_type = #tpu.core_type<tc>} {
    %c0 = arith.constant 0 : index
    %c0_0 = arith.constant 0 : index
    %0 = vector.load %arg0[%c0, %c0_0] : memref<16x24xf32, #tpu.memory_space<vmem>>, vector<16x24xf32>
    %c0_1 = arith.constant 0 : index
    %c0_2 = arith.constant 0 : index
    %1 = vector.load %arg1[%c0_1, %c0_2] : memref<24x32xf32, #tpu.memory_space<vmem>>, vector<24x32xf32>
    %cst = arith.constant dense<0.000000e+00> : vector<16x32xf32>
    %2 = tpu.matmul %0, %1, %cst {dimension_numbers = #tpu.dot_dimension_numbers<[1], [0], [0], [1], [0, 0, 1, 1], [], []>} : vector<16x24xf32>, vector<24x32xf32>, vector<16x32xf32> -> vector<16x32xf32>
    %c0_3 = arith.constant 0 : index
    %c0_4 = arith.constant 0 : index
    %3 = vector.load %arg2[%c0_3, %c0_4] : memref<1x32xf32, #tpu.memory_space<vmem>>, vector<1x32xf32>
    %4 = vector.broadcast %3 : vector<1x32xf32> to vector<16x32xf32>
    %5 = arith.addf %2, %4 : vector<16x32xf32>
    %c0_5 = arith.constant 0 : index
    %c0_6 = arith.constant 0 : index
    %6 = vector.load %arg3[%c0_5, %c0_6] : memref<32x32xf32, #tpu.memory_space<vmem>>, vector<32x32xf32>
    %cst_7 = arith.constant dense<0.000000e+00> : vector<16x32xf32>
    %7 = tpu.matmul %5, %6, %cst_7 {dimension_numbers = #tpu.dot_dimension_numbers<[1], [0], [0], [1], [0, 0, 1, 1], [], []>} : vector<16x32xf32>, vector<32x32xf32>, vector<16x32xf32> -> vector<16x32xf32>
    %c0_8 = arith.constant 0 : index
    %c0_9 = arith.constant 0 : index
    %8 = vector.load %arg4[%c0_8, %c0_9] : memref<1x32xf32, #tpu.memory_space<vmem>>, vector<1x32xf32>
    %9 = vector.broadcast %8 : vector<1x32xf32> to vector<16x32xf32>
    %10 = arith.addf %7, %9 : vector<16x32xf32>
    %c0_10 = arith.constant 0 : index
    %c0_11 = arith.constant 0 : index
    %11 = vector.load %arg5[%c0_10, %c0_11] : memref<16x32xf32, #tpu.memory_space<vmem>>, vector<16x32xf32>
    %12 = arith.addf %10, %11 : vector<16x32xf32>
    %c0_12 = arith.constant 0 : index
    %c0_13 = arith.constant 0 : index
    %13 = vector.load %arg6[%c0_12, %c0_13] : memref<16x16xf32, #tpu.memory_space<vmem>>, vector<16x16xf32>
    %14 = vector.shape_cast %12 : vector<16x32xf32> to vector<1x16x32xf32>
    %15 = vector.shape_cast %14 : vector<1x16x32xf32> to vector<1x16x32xf32>
    %16 = vector.broadcast %15 : vector<1x16x32xf32> to vector<4x16x32xf32>
    %c0_14 = arith.constant 0 : index
    %c0_15 = arith.constant 0 : index
    %c0_16 = arith.constant 0 : index
    %17 = vector.load %arg7[%c0_14, %c0_15, %c0_16] : memref<4x32x8xf32, #tpu.memory_space<vmem>>, vector<4x32x8xf32>
    "tpu.trace_start"() <{level = 10 : i32, message = "hnd,hdk->hnk"}> : () -> ()
    %cst_17 = arith.constant dense<0.000000e+00> : vector<4x16x8xf32>
    %18 = tpu.matmul %16, %17, %cst_17 {dimension_numbers = #tpu.dot_dimension_numbers<[2], [1], [1], [2], [0, 0, 0, 1, 1, 2], [0], [0]>} : vector<4x16x32xf32>, vector<4x32x8xf32>, vector<4x16x8xf32> -> vector<4x16x8xf32>
    "tpu.trace_stop"() : () -> ()
    %c0_18 = arith.constant 0 : index
    %c0_19 = arith.constant 0 : index
    %c0_20 = arith.constant 0 : index
    %19 = vector.load %arg8[%c0_18, %c0_19, %c0_20] : memref<4x32x8xf32, #tpu.memory_space<vmem>>, vector<4x32x8xf32>
    "tpu.trace_start"() <{level = 10 : i32, message = "hnd,hdk->hnk"}> : () -> ()
    %cst_21 = arith.constant dense<0.000000e+00> : vector<4x16x8xf32>
    %20 = tpu.matmul %16, %19, %cst_21 {dimension_numbers = #tpu.dot_dimension_numbers<[2], [1], [1], [2], [0, 0, 0, 1, 1, 2], [0], [0]>} : vector<4x16x32xf32>, vector<4x32x8xf32>, vector<4x16x8xf32> -> vector<4x16x8xf32>
    "tpu.trace_stop"() : () -> ()
    %c0_22 = arith.constant 0 : index
    %c0_23 = arith.constant 0 : index
    %c0_24 = arith.constant 0 : index
    %21 = vector.load %arg9[%c0_22, %c0_23, %c0_24] : memref<4x32x8xf32, #tpu.memory_space<vmem>>, vector<4x32x8xf32>
    "tpu.trace_start"() <{level = 10 : i32, message = "hnd,hde->hne"}> : () -> ()
    %cst_25 = arith.constant dense<0.000000e+00> : vector<4x16x8xf32>
    %22 = tpu.matmul %16, %21, %cst_25 {dimension_numbers = #tpu.dot_dimension_numbers<[2], [1], [1], [2], [0, 0, 0, 1, 1, 2], [0], [0]>} : vector<4x16x32xf32>, vector<4x32x8xf32>, vector<4x16x8xf32> -> vector<4x16x8xf32>
    "tpu.trace_stop"() : () -> ()
    "tpu.trace_start"() <{level = 10 : i32, message = "hqd,hkd->hqk"}> : () -> ()
    %cst_26 = arith.constant dense<0.000000e+00> : vector<4x16x16xf32>
    %23 = tpu.matmul %18, %20, %cst_26 {dimension_numbers = #tpu.dot_dimension_numbers<[2], [2], [1], [1], [0, 0, 0, 1, 1, 1], [0], [0]>} : vector<4x16x8xf32>, vector<4x16x8xf32>, vector<4x16x16xf32> -> vector<4x16x16xf32>
    "tpu.trace_stop"() : () -> ()
    %24 = vector.shape_cast %13 : vector<16x16xf32> to vector<1x16x16xf32>
    %25 = vector.broadcast %24 : vector<1x16x16xf32> to vector<4x16x16xf32>
    %26 = arith.addf %23, %25 : vector<4x16x16xf32>
    %cst_27 = arith.constant dense<0xFF800000> : vector<4x16xf32>
    %27 = vector.multi_reduction <maximumf>, %26, %cst_27 [2] : vector<4x16x16xf32> to vector<4x16xf32>
    %28 = vector.shape_cast %27 : vector<4x16xf32> to vector<4x16x1xf32>
    %29 = vector.broadcast %28 : vector<4x16x1xf32> to vector<4x16x16xf32>
    %30 = arith.subf %26, %29 : vector<4x16x16xf32>
    %31 = math.exp %30 : vector<4x16x16xf32>
    %cst_28 = arith.constant dense<0.000000e+00> : vector<4x16xf32>
    %32 = vector.multi_reduction <add>, %31, %cst_28 [2] : vector<4x16x16xf32> to vector<4x16xf32>
    %33 = vector.shape_cast %32 : vector<4x16xf32> to vector<4x16x1xf32>
    %34 = tpu.reciprocal %33 {approx = true} : vector<4x16x1xf32> -> vector<4x16x1xf32>
    %35 = vector.broadcast %34 : vector<4x16x1xf32> to vector<4x16x16xf32>
    %36 = arith.mulf %31, %35 : vector<4x16x16xf32>
    "tpu.trace_start"() <{level = 10 : i32, message = "hqk,hke->hqe"}> : () -> ()
    %cst_29 = arith.constant dense<0.000000e+00> : vector<4x16x8xf32>
    %37 = tpu.matmul %36, %22, %cst_29 {dimension_numbers = #tpu.dot_dimension_numbers<[2], [1], [1], [2], [0, 0, 0, 1, 1, 2], [0], [0]>} : vector<4x16x16xf32>, vector<4x16x8xf32>, vector<4x16x8xf32> -> vector<4x16x8xf32>
    "tpu.trace_stop"() : () -> ()
    %c0_30 = arith.constant 0 : index
    %c0_31 = arith.constant 0 : index
    %c0_32 = arith.constant 0 : index
    %38 = vector.load %arg10[%c0_30, %c0_31, %c0_32] : memref<4x8x32xf32, #tpu.memory_space<vmem>>, vector<4x8x32xf32>
    "tpu.trace_start"() <{level = 10 : i32, message = "hne,hed->hnd"}> : () -> ()
    %cst_33 = arith.constant dense<0.000000e+00> : vector<4x16x32xf32>
    %39 = tpu.matmul %37, %38, %cst_33 {dimension_numbers = #tpu.dot_dimension_numbers<[2], [1], [1], [2], [0, 0, 0, 1, 1, 2], [0], [0]>} : vector<4x16x8xf32>, vector<4x8x32xf32>, vector<4x16x32xf32> -> vector<4x16x32xf32>
    "tpu.trace_stop"() : () -> ()
    %cst_34 = arith.constant dense<0.000000e+00> : vector<16x32xf32>
    %40 = vector.multi_reduction <add>, %39, %cst_34 [0] : vector<4x16x32xf32> to vector<16x32xf32>
    %41 = arith.addf %40, %12 : vector<16x32xf32>
    %c0_35 = arith.constant 0 : index
    %c0_36 = arith.constant 0 : index
    %42 = vector.load %arg11[%c0_35, %c0_36] : memref<1x32xf32, #tpu.memory_space<vmem>>, vector<1x32xf32>
    %c0_37 = arith.constant 0 : index
    %c0_38 = arith.constant 0 : index
    %43 = vector.load %arg12[%c0_37, %c0_38] : memref<1x32xf32, #tpu.memory_space<vmem>>, vector<1x32xf32>
    %cst_39 = arith.constant dense<0.000000e+00> : vector<16xf32>
    %44 = vector.multi_reduction <add>, %41, %cst_39 [1] : vector<16x32xf32> to vector<16xf32>
    %45 = vector.shape_cast %44 : vector<16xf32> to vector<16x1xf32>
    %cst_40 = arith.constant 3.200000e+01 : f32
    %46 = vector.broadcast %cst_40 : f32 to vector<16x1xf32>
    %47 = arith.divf %45, %46 : vector<16x1xf32>
    %48 = vector.broadcast %47 : vector<16x1xf32> to vector<16x32xf32>
    %49 = arith.subf %41, %48 : vector<16x32xf32>
    %50 = arith.mulf %49, %49 : vector<16x32xf32>
    %cst_41 = arith.constant dense<0.000000e+00> : vector<16xf32>
    %51 = vector.multi_reduction <add>, %50, %cst_41 [1] : vector<16x32xf32> to vector<16xf32>
    %52 = vector.shape_cast %51 : vector<16xf32> to vector<16x1xf32>
    %cst_42 = arith.constant 3.200000e+01 : f32
    %53 = vector.broadcast %cst_42 : f32 to vector<16x1xf32>
    %54 = arith.divf %52, %53 : vector<16x1xf32>
    %55 = vector.broadcast %47 : vector<16x1xf32> to vector<16x32xf32>
    %56 = arith.subf %41, %55 : vector<16x32xf32>
    %cst_43 = arith.constant 9.99999997E-7 : f32
    %57 = vector.broadcast %cst_43 : f32 to vector<16x1xf32>
    %58 = arith.addf %54, %57 : vector<16x1xf32>
    %59 = math.rsqrt %58 : vector<16x1xf32>
    %60 = vector.broadcast %59 : vector<16x1xf32> to vector<16x32xf32>
    %61 = arith.mulf %56, %60 : vector<16x32xf32>
    %62 = vector.broadcast %42 : vector<1x32xf32> to vector<16x32xf32>
    %63 = arith.mulf %61, %62 : vector<16x32xf32>
    %64 = vector.broadcast %43 : vector<1x32xf32> to vector<16x32xf32>
    %65 = arith.addf %63, %64 : vector<16x32xf32>
    %c0_44 = arith.constant 0 : index
    %c0_45 = arith.constant 0 : index
    %66 = vector.load %arg13[%c0_44, %c0_45] : memref<32x64xf32, #tpu.memory_space<vmem>>, vector<32x64xf32>
    %cst_46 = arith.constant dense<0.000000e+00> : vector<16x64xf32>
    %67 = tpu.matmul %65, %66, %cst_46 {dimension_numbers = #tpu.dot_dimension_numbers<[1], [0], [0], [1], [0, 0, 1, 1], [], []>} : vector<16x32xf32>, vector<32x64xf32>, vector<16x64xf32> -> vector<16x64xf32>
    %c0_47 = arith.constant 0 : index
    %c0_48 = arith.constant 0 : index
    %68 = vector.load %arg14[%c0_47, %c0_48] : memref<1x64xf32, #tpu.memory_space<vmem>>, vector<1x64xf32>
    %69 = vector.broadcast %68 : vector<1x64xf32> to vector<16x64xf32>
    %70 = arith.addf %67, %69 : vector<16x64xf32>
    %cst_49 = arith.constant 0.000000e+00 : f32
    %71 = vector.broadcast %cst_49 : f32 to vector<16x64xf32>
    %72 = arith.maximumf %70, %71 : vector<16x64xf32>
    %c0_50 = arith.constant 0 : index
    %c0_51 = arith.constant 0 : index
    %73 = vector.load %arg15[%c0_50, %c0_51] : memref<64x32xf32, #tpu.memory_space<vmem>>, vector<64x32xf32>
    %cst_52 = arith.constant dense<0.000000e+00> : vector<16x32xf32>
    %74 = tpu.matmul %72, %73, %cst_52 {dimension_numbers = #tpu.dot_dimension_numbers<[1], [0], [0], [1], [0, 0, 1, 1], [], []>} : vector<16x64xf32>, vector<64x32xf32>, vector<16x32xf32> -> vector<16x32xf32>
    %c0_53 = arith.constant 0 : index
    %c0_54 = arith.constant 0 : index
    %75 = vector.load %arg16[%c0_53, %c0_54] : memref<1x32xf32, #tpu.memory_space<vmem>>, vector<1x32xf32>
    %76 = vector.broadcast %75 : vector<1x32xf32> to vector<16x32xf32>
    %77 = arith.addf %74, %76 : vector<16x32xf32>
    %78 = arith.addf %77, %65 : vector<16x32xf32>
    %c0_55 = arith.constant 0 : index
    %c0_56 = arith.constant 0 : index
    %79 = vector.load %arg17[%c0_55, %c0_56] : memref<1x32xf32, #tpu.memory_space<vmem>>, vector<1x32xf32>
    %c0_57 = arith.constant 0 : index
    %c0_58 = arith.constant 0 : index
    %80 = vector.load %arg18[%c0_57, %c0_58] : memref<1x32xf32, #tpu.memory_space<vmem>>, vector<1x32xf32>
    %cst_59 = arith.constant dense<0.000000e+00> : vector<16xf32>
    %81 = vector.multi_reduction <add>, %78, %cst_59 [1] : vector<16x32xf32> to vector<16xf32>
    %82 = vector.shape_cast %81 : vector<16xf32> to vector<16x1xf32>
    %cst_60 = arith.constant 3.200000e+01 : f32
    %83 = vector.broadcast %cst_60 : f32 to vector<16x1xf32>
    %84 = arith.divf %82, %83 : vector<16x1xf32>
    %85 = vector.broadcast %84 : vector<16x1xf32> to vector<16x32xf32>
    %86 = arith.subf %78, %85 : vector<16x32xf32>
    %87 = arith.mulf %86, %86 : vector<16x32xf32>
    %cst_61 = arith.constant dense<0.000000e+00> : vector<16xf32>
    %88 = vector.multi_reduction <add>, %87, %cst_61 [1] : vector<16x32xf32> to vector<16xf32>
    %89 = vector.shape_cast %88 : vector<16xf32> to vector<16x1xf32>
    %cst_62 = arith.constant 3.200000e+01 : f32
    %90 = vector.broadcast %cst_62 : f32 to vector<16x1xf32>
    %91 = arith.divf %89, %90 : vector<16x1xf32>
    %92 = vector.broadcast %84 : vector<16x1xf32> to vector<16x32xf32>
    %93 = arith.subf %78, %92 : vector<16x32xf32>
    %cst_63 = arith.constant 9.99999997E-7 : f32
    %94 = vector.broadcast %cst_63 : f32 to vector<16x1xf32>
    %95 = arith.addf %91, %94 : vector<16x1xf32>
    %96 = math.rsqrt %95 : vector<16x1xf32>
    %97 = vector.broadcast %96 : vector<16x1xf32> to vector<16x32xf32>
    %98 = arith.mulf %93, %97 : vector<16x32xf32>
    %99 = vector.broadcast %79 : vector<1x32xf32> to vector<16x32xf32>
    %100 = arith.mulf %98, %99 : vector<16x32xf32>
    %101 = vector.broadcast %80 : vector<1x32xf32> to vector<16x32xf32>
    %102 = arith.addf %100, %101 : vector<16x32xf32>
    %103 = vector.shape_cast %102 : vector<16x32xf32> to vector<1x16x32xf32>
    %104 = vector.shape_cast %103 : vector<1x16x32xf32> to vector<1x16x32xf32>
    %105 = vector.broadcast %104 : vector<1x16x32xf32> to vector<4x16x32xf32>
    %c0_64 = arith.constant 0 : index
    %c0_65 = arith.constant 0 : index
    %c0_66 = arith.constant 0 : index
    %106 = vector.load %arg19[%c0_64, %c0_65, %c0_66] : memref<4x32x8xf32, #tpu.memory_space<vmem>>, vector<4x32x8xf32>
    "tpu.trace_start"() <{level = 10 : i32, message = "hnd,hdk->hnk"}> : () -> ()
    %cst_67 = arith.constant dense<0.000000e+00> : vector<4x16x8xf32>
    %107 = tpu.matmul %105, %106, %cst_67 {dimension_numbers = #tpu.dot_dimension_numbers<[2], [1], [1], [2], [0, 0, 0, 1, 1, 2], [0], [0]>} : vector<4x16x32xf32>, vector<4x32x8xf32>, vector<4x16x8xf32> -> vector<4x16x8xf32>
    "tpu.trace_stop"() : () -> ()
    %c0_68 = arith.constant 0 : index
    %c0_69 = arith.constant 0 : index
    %c0_70 = arith.constant 0 : index
    %108 = vector.load %arg20[%c0_68, %c0_69, %c0_70] : memref<4x32x8xf32, #tpu.memory_space<vmem>>, vector<4x32x8xf32>
    "tpu.trace_start"() <{level = 10 : i32, message = "hnd,hdk->hnk"}> : () -> ()
    %cst_71 = arith.constant dense<0.000000e+00> : vector<4x16x8xf32>
    %109 = tpu.matmul %105, %108, %cst_71 {dimension_numbers = #tpu.dot_dimension_numbers<[2], [1], [1], [2], [0, 0, 0, 1, 1, 2], [0], [0]>} : vector<4x16x32xf32>, vector<4x32x8xf32>, vector<4x16x8xf32> -> vector<4x16x8xf32>
    "tpu.trace_stop"() : () -> ()
    %c0_72 = arith.constant 0 : index
    %c0_73 = arith.constant 0 : index
    %c0_74 = arith.constant 0 : index
    %110 = vector.load %arg21[%c0_72, %c0_73, %c0_74] : memref<4x32x8xf32, #tpu.memory_space<vmem>>, vector<4x32x8xf32>
    "tpu.trace_start"() <{level = 10 : i32, message = "hnd,hde->hne"}> : () -> ()
    %cst_75 = arith.constant dense<0.000000e+00> : vector<4x16x8xf32>
    %111 = tpu.matmul %105, %110, %cst_75 {dimension_numbers = #tpu.dot_dimension_numbers<[2], [1], [1], [2], [0, 0, 0, 1, 1, 2], [0], [0]>} : vector<4x16x32xf32>, vector<4x32x8xf32>, vector<4x16x8xf32> -> vector<4x16x8xf32>
    "tpu.trace_stop"() : () -> ()
    "tpu.trace_start"() <{level = 10 : i32, message = "hqd,hkd->hqk"}> : () -> ()
    %cst_76 = arith.constant dense<0.000000e+00> : vector<4x16x16xf32>
    %112 = tpu.matmul %107, %109, %cst_76 {dimension_numbers = #tpu.dot_dimension_numbers<[2], [2], [1], [1], [0, 0, 0, 1, 1, 1], [0], [0]>} : vector<4x16x8xf32>, vector<4x16x8xf32>, vector<4x16x16xf32> -> vector<4x16x16xf32>
    "tpu.trace_stop"() : () -> ()
    %113 = vector.shape_cast %13 : vector<16x16xf32> to vector<1x16x16xf32>
    %114 = vector.broadcast %113 : vector<1x16x16xf32> to vector<4x16x16xf32>
    %115 = arith.addf %112, %114 : vector<4x16x16xf32>
    %cst_77 = arith.constant dense<0xFF800000> : vector<4x16xf32>
    %116 = vector.multi_reduction <maximumf>, %115, %cst_77 [2] : vector<4x16x16xf32> to vector<4x16xf32>
    %117 = vector.shape_cast %116 : vector<4x16xf32> to vector<4x16x1xf32>
    %118 = vector.broadcast %117 : vector<4x16x1xf32> to vector<4x16x16xf32>
    %119 = arith.subf %115, %118 : vector<4x16x16xf32>
    %120 = math.exp %119 : vector<4x16x16xf32>
    %cst_78 = arith.constant dense<0.000000e+00> : vector<4x16xf32>
    %121 = vector.multi_reduction <add>, %120, %cst_78 [2] : vector<4x16x16xf32> to vector<4x16xf32>
    %122 = vector.shape_cast %121 : vector<4x16xf32> to vector<4x16x1xf32>
    %123 = tpu.reciprocal %122 {approx = true} : vector<4x16x1xf32> -> vector<4x16x1xf32>
    %124 = vector.broadcast %123 : vector<4x16x1xf32> to vector<4x16x16xf32>
    %125 = arith.mulf %120, %124 : vector<4x16x16xf32>
    "tpu.trace_start"() <{level = 10 : i32, message = "hqk,hke->hqe"}> : () -> ()
    %cst_79 = arith.constant dense<0.000000e+00> : vector<4x16x8xf32>
    %126 = tpu.matmul %125, %111, %cst_79 {dimension_numbers = #tpu.dot_dimension_numbers<[2], [1], [1], [2], [0, 0, 0, 1, 1, 2], [0], [0]>} : vector<4x16x16xf32>, vector<4x16x8xf32>, vector<4x16x8xf32> -> vector<4x16x8xf32>
    "tpu.trace_stop"() : () -> ()
    %c0_80 = arith.constant 0 : index
    %c0_81 = arith.constant 0 : index
    %c0_82 = arith.constant 0 : index
    %127 = vector.load %arg22[%c0_80, %c0_81, %c0_82] : memref<4x8x32xf32, #tpu.memory_space<vmem>>, vector<4x8x32xf32>
    "tpu.trace_start"() <{level = 10 : i32, message = "hne,hed->hnd"}> : () -> ()
    %cst_83 = arith.constant dense<0.000000e+00> : vector<4x16x32xf32>
    %128 = tpu.matmul %126, %127, %cst_83 {dimension_numbers = #tpu.dot_dimension_numbers<[2], [1], [1], [2], [0, 0, 0, 1, 1, 2], [0], [0]>} : vector<4x16x8xf32>, vector<4x8x32xf32>, vector<4x16x32xf32> -> vector<4x16x32xf32>
    "tpu.trace_stop"() : () -> ()
    %cst_84 = arith.constant dense<0.000000e+00> : vector<16x32xf32>
    %129 = vector.multi_reduction <add>, %128, %cst_84 [0] : vector<4x16x32xf32> to vector<16x32xf32>
    %130 = arith.addf %129, %102 : vector<16x32xf32>
    %c0_85 = arith.constant 0 : index
    %c0_86 = arith.constant 0 : index
    %131 = vector.load %arg23[%c0_85, %c0_86] : memref<1x32xf32, #tpu.memory_space<vmem>>, vector<1x32xf32>
    %c0_87 = arith.constant 0 : index
    %c0_88 = arith.constant 0 : index
    %132 = vector.load %arg24[%c0_87, %c0_88] : memref<1x32xf32, #tpu.memory_space<vmem>>, vector<1x32xf32>
    %cst_89 = arith.constant dense<0.000000e+00> : vector<16xf32>
    %133 = vector.multi_reduction <add>, %130, %cst_89 [1] : vector<16x32xf32> to vector<16xf32>
    %134 = vector.shape_cast %133 : vector<16xf32> to vector<16x1xf32>
    %cst_90 = arith.constant 3.200000e+01 : f32
    %135 = vector.broadcast %cst_90 : f32 to vector<16x1xf32>
    %136 = arith.divf %134, %135 : vector<16x1xf32>
    %137 = vector.broadcast %136 : vector<16x1xf32> to vector<16x32xf32>
    %138 = arith.subf %130, %137 : vector<16x32xf32>
    %139 = arith.mulf %138, %138 : vector<16x32xf32>
    %cst_91 = arith.constant dense<0.000000e+00> : vector<16xf32>
    %140 = vector.multi_reduction <add>, %139, %cst_91 [1] : vector<16x32xf32> to vector<16xf32>
    %141 = vector.shape_cast %140 : vector<16xf32> to vector<16x1xf32>
    %cst_92 = arith.constant 3.200000e+01 : f32
    %142 = vector.broadcast %cst_92 : f32 to vector<16x1xf32>
    %143 = arith.divf %141, %142 : vector<16x1xf32>
    %144 = vector.broadcast %136 : vector<16x1xf32> to vector<16x32xf32>
    %145 = arith.subf %130, %144 : vector<16x32xf32>
    %cst_93 = arith.constant 9.99999997E-7 : f32
    %146 = vector.broadcast %cst_93 : f32 to vector<16x1xf32>
    %147 = arith.addf %143, %146 : vector<16x1xf32>
    %148 = math.rsqrt %147 : vector<16x1xf32>
    %149 = vector.broadcast %148 : vector<16x1xf32> to vector<16x32xf32>
    %150 = arith.mulf %145, %149 : vector<16x32xf32>
    %151 = vector.broadcast %131 : vector<1x32xf32> to vector<16x32xf32>
    %152 = arith.mulf %150, %151 : vector<16x32xf32>
    %153 = vector.broadcast %132 : vector<1x32xf32> to vector<16x32xf32>
    %154 = arith.addf %152, %153 : vector<16x32xf32>
    %c0_94 = arith.constant 0 : index
    %c0_95 = arith.constant 0 : index
    %155 = vector.load %arg25[%c0_94, %c0_95] : memref<32x64xf32, #tpu.memory_space<vmem>>, vector<32x64xf32>
    %cst_96 = arith.constant dense<0.000000e+00> : vector<16x64xf32>
    %156 = tpu.matmul %154, %155, %cst_96 {dimension_numbers = #tpu.dot_dimension_numbers<[1], [0], [0], [1], [0, 0, 1, 1], [], []>} : vector<16x32xf32>, vector<32x64xf32>, vector<16x64xf32> -> vector<16x64xf32>
    %c0_97 = arith.constant 0 : index
    %c0_98 = arith.constant 0 : index
    %157 = vector.load %arg26[%c0_97, %c0_98] : memref<1x64xf32, #tpu.memory_space<vmem>>, vector<1x64xf32>
    %158 = vector.broadcast %157 : vector<1x64xf32> to vector<16x64xf32>
    %159 = arith.addf %156, %158 : vector<16x64xf32>
    %cst_99 = arith.constant 0.000000e+00 : f32
    %160 = vector.broadcast %cst_99 : f32 to vector<16x64xf32>
    %161 = arith.maximumf %159, %160 : vector<16x64xf32>
    %c0_100 = arith.constant 0 : index
    %c0_101 = arith.constant 0 : index
    %162 = vector.load %arg27[%c0_100, %c0_101] : memref<64x32xf32, #tpu.memory_space<vmem>>, vector<64x32xf32>
    %cst_102 = arith.constant dense<0.000000e+00> : vector<16x32xf32>
    %163 = tpu.matmul %161, %162, %cst_102 {dimension_numbers = #tpu.dot_dimension_numbers<[1], [0], [0], [1], [0, 0, 1, 1], [], []>} : vector<16x64xf32>, vector<64x32xf32>, vector<16x32xf32> -> vector<16x32xf32>
    %c0_103 = arith.constant 0 : index
    %c0_104 = arith.constant 0 : index
    %164 = vector.load %arg28[%c0_103, %c0_104] : memref<1x32xf32, #tpu.memory_space<vmem>>, vector<1x32xf32>
    %165 = vector.broadcast %164 : vector<1x32xf32> to vector<16x32xf32>
    %166 = arith.addf %163, %165 : vector<16x32xf32>
    %167 = arith.addf %166, %154 : vector<16x32xf32>
    %c0_105 = arith.constant 0 : index
    %c0_106 = arith.constant 0 : index
    %168 = vector.load %arg29[%c0_105, %c0_106] : memref<1x32xf32, #tpu.memory_space<vmem>>, vector<1x32xf32>
    %c0_107 = arith.constant 0 : index
    %c0_108 = arith.constant 0 : index
    %169 = vector.load %arg30[%c0_107, %c0_108] : memref<1x32xf32, #tpu.memory_space<vmem>>, vector<1x32xf32>
    %cst_109 = arith.constant dense<0.000000e+00> : vector<16xf32>
    %170 = vector.multi_reduction <add>, %167, %cst_109 [1] : vector<16x32xf32> to vector<16xf32>
    %171 = vector.shape_cast %170 : vector<16xf32> to vector<16x1xf32>
    %cst_110 = arith.constant 3.200000e+01 : f32
    %172 = vector.broadcast %cst_110 : f32 to vector<16x1xf32>
    %173 = arith.divf %171, %172 : vector<16x1xf32>
    %174 = vector.broadcast %173 : vector<16x1xf32> to vector<16x32xf32>
    %175 = arith.subf %167, %174 : vector<16x32xf32>
    %176 = arith.mulf %175, %175 : vector<16x32xf32>
    %cst_111 = arith.constant dense<0.000000e+00> : vector<16xf32>
    %177 = vector.multi_reduction <add>, %176, %cst_111 [1] : vector<16x32xf32> to vector<16xf32>
    %178 = vector.shape_cast %177 : vector<16xf32> to vector<16x1xf32>
    %cst_112 = arith.constant 3.200000e+01 : f32
    %179 = vector.broadcast %cst_112 : f32 to vector<16x1xf32>
    %180 = arith.divf %178, %179 : vector<16x1xf32>
    %181 = vector.broadcast %173 : vector<16x1xf32> to vector<16x32xf32>
    %182 = arith.subf %167, %181 : vector<16x32xf32>
    %cst_113 = arith.constant 9.99999997E-7 : f32
    %183 = vector.broadcast %cst_113 : f32 to vector<16x1xf32>
    %184 = arith.addf %180, %183 : vector<16x1xf32>
    %185 = math.rsqrt %184 : vector<16x1xf32>
    %186 = vector.broadcast %185 : vector<16x1xf32> to vector<16x32xf32>
    %187 = arith.mulf %182, %186 : vector<16x32xf32>
    %188 = vector.broadcast %168 : vector<1x32xf32> to vector<16x32xf32>
    %189 = arith.mulf %187, %188 : vector<16x32xf32>
    %190 = vector.broadcast %169 : vector<1x32xf32> to vector<16x32xf32>
    %191 = arith.addf %189, %190 : vector<16x32xf32>
    %192 = vector.extract_strided_slice %191 {offsets = [0, 0], sizes = [1, 32], strides = [1, 1]} : vector<16x32xf32> to vector<1x32xf32>
    %193 = vector.extract_strided_slice %191 {offsets = [8, 0], sizes = [1, 32], strides = [1, 1]} : vector<16x32xf32> to vector<1x32xf32>
    %194 = tpu.concatenate %192, %193 in 0 : vector<1x32xf32>, vector<1x32xf32> -> vector<2x32xf32>
    %195 = vector.extract_strided_slice %191 {offsets = [1, 0], sizes = [1, 32], strides = [1, 1]} : vector<16x32xf32> to vector<1x32xf32>
    %196 = vector.extract_strided_slice %191 {offsets = [9, 0], sizes = [1, 32], strides = [1, 1]} : vector<16x32xf32> to vector<1x32xf32>
    %197 = tpu.concatenate %195, %196 in 0 : vector<1x32xf32>, vector<1x32xf32> -> vector<2x32xf32>
    %198 = vector.extract_strided_slice %191 {offsets = [2, 0], sizes = [1, 32], strides = [1, 1]} : vector<16x32xf32> to vector<1x32xf32>
    %199 = vector.extract_strided_slice %191 {offsets = [10, 0], sizes = [1, 32], strides = [1, 1]} : vector<16x32xf32> to vector<1x32xf32>
    %200 = tpu.concatenate %198, %199 in 0 : vector<1x32xf32>, vector<1x32xf32> -> vector<2x32xf32>
    %201 = vector.extract_strided_slice %191 {offsets = [3, 0], sizes = [1, 32], strides = [1, 1]} : vector<16x32xf32> to vector<1x32xf32>
    %202 = vector.extract_strided_slice %191 {offsets = [11, 0], sizes = [1, 32], strides = [1, 1]} : vector<16x32xf32> to vector<1x32xf32>
    %203 = tpu.concatenate %201, %202 in 0 : vector<1x32xf32>, vector<1x32xf32> -> vector<2x32xf32>
    %204 = vector.extract_strided_slice %191 {offsets = [4, 0], sizes = [1, 32], strides = [1, 1]} : vector<16x32xf32> to vector<1x32xf32>
    %205 = vector.extract_strided_slice %191 {offsets = [12, 0], sizes = [1, 32], strides = [1, 1]} : vector<16x32xf32> to vector<1x32xf32>
    %206 = tpu.concatenate %204, %205 in 0 : vector<1x32xf32>, vector<1x32xf32> -> vector<2x32xf32>
    %207 = vector.extract_strided_slice %191 {offsets = [5, 0], sizes = [1, 32], strides = [1, 1]} : vector<16x32xf32> to vector<1x32xf32>
    %208 = vector.extract_strided_slice %191 {offsets = [13, 0], sizes = [1, 32], strides = [1, 1]} : vector<16x32xf32> to vector<1x32xf32>
    %209 = tpu.concatenate %207, %208 in 0 : vector<1x32xf32>, vector<1x32xf32> -> vector<2x32xf32>
    %210 = vector.extract_strided_slice %191 {offsets = [6, 0], sizes = [1, 32], strides = [1, 1]} : vector<16x32xf32> to vector<1x32xf32>
    %211 = vector.extract_strided_slice %191 {offsets = [14, 0], sizes = [1, 32], strides = [1, 1]} : vector<16x32xf32> to vector<1x32xf32>
    %212 = tpu.concatenate %210, %211 in 0 : vector<1x32xf32>, vector<1x32xf32> -> vector<2x32xf32>
    %213 = vector.extract_strided_slice %191 {offsets = [7, 0], sizes = [1, 32], strides = [1, 1]} : vector<16x32xf32> to vector<1x32xf32>
    %214 = vector.extract_strided_slice %191 {offsets = [15, 0], sizes = [1, 32], strides = [1, 1]} : vector<16x32xf32> to vector<1x32xf32>
    %215 = tpu.concatenate %213, %214 in 0 : vector<1x32xf32>, vector<1x32xf32> -> vector<2x32xf32>
    %216 = tpu.concatenate %194, %197, %200, %203, %206, %209, %212, %215 in 1 : vector<2x32xf32>, vector<2x32xf32>, vector<2x32xf32>, vector<2x32xf32>, vector<2x32xf32>, vector<2x32xf32>, vector<2x32xf32>, vector<2x32xf32> -> vector<2x256xf32>
    %c0_114 = arith.constant 0 : index
    %c0_115 = arith.constant 0 : index
    %217 = vector.load %arg41[%c0_114, %c0_115] : memref<2x256xf32, #tpu.memory_space<vmem>>, vector<2x256xf32>
    tpu.vector_store %arg41[%c0_114, %c0_115], %216 {strides = array<i32>} : memref<2x256xf32, #tpu.memory_space<vmem>>, vector<2x256xf32>,
    %c0_116 = arith.constant 0 : index
    %c0_117 = arith.constant 0 : index
    %218 = vector.load %arg31[%c0_116, %c0_117] : memref<256x128xf32, #tpu.memory_space<vmem>>, vector<256x128xf32>
    %cst_118 = arith.constant dense<0.000000e+00> : vector<2x128xf32>
    %219 = tpu.matmul %216, %218, %cst_118 {dimension_numbers = #tpu.dot_dimension_numbers<[1], [0], [0], [1], [0, 0, 1, 1], [], []>} : vector<2x256xf32>, vector<256x128xf32>, vector<2x128xf32> -> vector<2x128xf32>
    %c0_119 = arith.constant 0 : index
    %c0_120 = arith.constant 0 : index
    %220 = vector.load %arg32[%c0_119, %c0_120] : memref<1x128xf32, #tpu.memory_space<vmem>>, vector<1x128xf32>
    %221 = vector.broadcast %220 : vector<1x128xf32> to vector<2x128xf32>
    %222 = arith.addf %219, %221 : vector<2x128xf32>
    %cst_121 = arith.constant 0.000000e+00 : f32
    %223 = vector.broadcast %cst_121 : f32 to vector<2x128xf32>
    %224 = arith.maximumf %222, %223 : vector<2x128xf32>
    %c0_122 = arith.constant 0 : index
    %c0_123 = arith.constant 0 : index
    %225 = vector.load %arg33[%c0_122, %c0_123] : memref<128x32xf32, #tpu.memory_space<vmem>>, vector<128x32xf32>
    %cst_124 = arith.constant dense<0.000000e+00> : vector<2x32xf32>
    %226 = tpu.matmul %224, %225, %cst_124 {dimension_numbers = #tpu.dot_dimension_numbers<[1], [0], [0], [1], [0, 0, 1, 1], [], []>} : vector<2x128xf32>, vector<128x32xf32>, vector<2x32xf32> -> vector<2x32xf32>
    %c0_125 = arith.constant 0 : index
    %c0_126 = arith.constant 0 : index
    %227 = vector.load %arg34[%c0_125, %c0_126] : memref<1x32xf32, #tpu.memory_space<vmem>>, vector<1x32xf32>
    %228 = vector.broadcast %227 : vector<1x32xf32> to vector<2x32xf32>
    %229 = arith.addf %226, %228 : vector<2x32xf32>
    %cst_127 = arith.constant 0.000000e+00 : f32
    %230 = vector.broadcast %cst_127 : f32 to vector<2x32xf32>
    %231 = arith.maximumf %229, %230 : vector<2x32xf32>
    %c0_128 = arith.constant 0 : index
    %c0_129 = arith.constant 0 : index
    %232 = vector.load %arg35[%c0_128, %c0_129] : memref<32x128xf32, #tpu.memory_space<vmem>>, vector<32x128xf32>
    %cst_130 = arith.constant dense<0.000000e+00> : vector<2x128xf32>
    %233 = tpu.matmul %231, %232, %cst_130 {dimension_numbers = #tpu.dot_dimension_numbers<[1], [0], [0], [1], [0, 0, 1, 1], [], []>} : vector<2x32xf32>, vector<32x128xf32>, vector<2x128xf32> -> vector<2x128xf32>
    %c0_131 = arith.constant 0 : index
    %c0_132 = arith.constant 0 : index
    %234 = vector.load %arg36[%c0_131, %c0_132] : memref<1x128xf32, #tpu.memory_space<vmem>>, vector<1x128xf32>
    %235 = vector.broadcast %234 : vector<1x128xf32> to vector<2x128xf32>
    %236 = arith.addf %233, %235 : vector<2x128xf32>
    %cst_133 = arith.constant 0.000000e+00 : f32
    %237 = vector.broadcast %cst_133 : f32 to vector<2x128xf32>
    %238 = arith.maximumf %236, %237 : vector<2x128xf32>
    %c0_134 = arith.constant 0 : index
    %c0_135 = arith.constant 0 : index
    %239 = vector.load %arg37[%c0_134, %c0_135] : memref<128x64xf32, #tpu.memory_space<vmem>>, vector<128x64xf32>
    %cst_136 = arith.constant dense<0.000000e+00> : vector<2x64xf32>
    %240 = tpu.matmul %238, %239, %cst_136 {dimension_numbers = #tpu.dot_dimension_numbers<[1], [0], [0], [1], [0, 0, 1, 1], [], []>} : vector<2x128xf32>, vector<128x64xf32>, vector<2x64xf32> -> vector<2x64xf32>
    %c0_137 = arith.constant 0 : index
    %c0_138 = arith.constant 0 : index
    %241 = vector.load %arg38[%c0_137, %c0_138] : memref<1x64xf32, #tpu.memory_space<vmem>>, vector<1x64xf32>
    %242 = vector.broadcast %241 : vector<1x64xf32> to vector<2x64xf32>
    %243 = arith.addf %240, %242 : vector<2x64xf32>
    %cst_139 = arith.constant 0.000000e+00 : f32
    %244 = vector.broadcast %cst_139 : f32 to vector<2x64xf32>
    %245 = arith.maximumf %243, %244 : vector<2x64xf32>
    %c0_140 = arith.constant 0 : index
    %c0_141 = arith.constant 0 : index
    %246 = vector.load %arg39[%c0_140, %c0_141] : memref<64x128xf32, #tpu.memory_space<vmem>>, vector<64x128xf32>
    %cst_142 = arith.constant dense<0.000000e+00> : vector<2x128xf32>
    %247 = tpu.matmul %245, %246, %cst_142 {dimension_numbers = #tpu.dot_dimension_numbers<[1], [0], [0], [1], [0, 0, 1, 1], [], []>} : vector<2x64xf32>, vector<64x128xf32>, vector<2x128xf32> -> vector<2x128xf32>
    %c0_143 = arith.constant 0 : index
    %c0_144 = arith.constant 0 : index
    %248 = vector.load %arg40[%c0_143, %c0_144] : memref<1x128xf32, #tpu.memory_space<vmem>>, vector<1x128xf32>
    %249 = vector.broadcast %248 : vector<1x128xf32> to vector<2x128xf32>
    %250 = arith.addf %247, %249 : vector<2x128xf32>
    %c0_145 = arith.constant 0 : index
    %c0_146 = arith.constant 0 : index
    %251 = vector.load %arg42[%c0_145, %c0_146] : memref<2x128xf32, #tpu.memory_space<vmem>>, vector<2x128xf32>
    tpu.vector_store %arg42[%c0_145, %c0_146], %250 {strides = array<i32>} : memref<2x128xf32, #tpu.memory_space<vmem>>, vector<2x128xf32>,
    return
  }
}

</mosaic_0001>

<bundles_post_ra>
// kernel: transformer_forward.1
= control target key start
LH: loop header
LB: loop body
LE: loop exit
PB: predicated region body
PF: predicated region fallthrough
CT: control target
= control target key end

     0   :  { %s7346_s6 = smov 1   ;;  %s7347_s10 = smov 2   ;;  %s8208_s0 = inlined_call_operand.smem [shape: u32[43], index: -1, kind: input, shape index: {}] }
   0x1   :  { %s7403_s5 = sld [smem:[%s8208_s0]]   ;;  %s7348_s14 = smov 3  }
   0x2   :  { %s7408_s9 = sld [smem:[%s8208_s0 + %s7346_s6]]   ;;  %s7349_s18 = smov 4  }
   0x3   :  { %s7413_s13 = sld [smem:[%s8208_s0 + %s7347_s10]]   ;;  %s7350_s22 = smov 5  }
   0x4   :  { %s7418_s17 = sld [smem:[%s8208_s0 + %s7348_s14]]   ;;  %s7351_s26 = smov 6  }
   0x5   :  { %s7423_s21 = sld [smem:[%s8208_s0 + %s7349_s18]]   ;;  %s7352_s30 = smov 7  }
   0x6   :  { %s7428_s25 = sld [smem:[%s8208_s0 + %s7350_s22]]   ;;  %s7353_s4 = smov 8  }
   0x7   :  { %s7433_s29 = sld [smem:[%s8208_s0 + %s7351_s26]]   ;;  %s7354_s10 = smov 9  }
   0x8   :  { %s7438_s3 = sld [smem:[%s8208_s0 + %s7352_s30]]   ;;  %s7355_s15 = smov 10  }
   0x9   :  { %s7443_s8 = sld [smem:[%s8208_s0 + %s7353_s4]]   ;;  %s7356_s20 = smov 11  }
   0xa   :  { %s7448_s14 = sld [smem:[%s8208_s0 + %s7354_s10]]   ;;  %s7357_s26 = smov 12  }
   0xb   :  { %s7453_s19 = sld [smem:[%s8208_s0 + %s7355_s15]]   ;;  %s7358_s1 = smov 13  }
   0xc   :  { %s7458_s24 = sld [smem:[%s8208_s0 + %s7356_s20]]   ;;  %s7359_s7 = smov 14  }
   0xd   :  { %s7463_s30 = sld [smem:[%s8208_s0 + %s7357_s26]]   ;;  %s7360_s15 = smov 15  }
   0xe   :  { %s7468_s6 = sld [smem:[%s8208_s0 + %s7358_s1]]   ;;  %s7361_s22 = smov 16  }
   0xf   :  { %s7473_s12 = sld [smem:[%s8208_s0 + %s7359_s7]]   ;;  %s7362_s28 = smov 17  }
  0x10   :  { %s7478_s20 = sld [smem:[%s8208_s0 + %s7360_s15]]   ;;  %s7363_s7 = smov 18  }
  0x11   :  { %s7483_s27 = sld [smem:[%s8208_s0 + %s7361_s22]]   ;;  %s7364_s15 = smov 19  }
  0x12   :  { %s7488_s4 = sld [smem:[%s8208_s0 + %s7362_s28]]   ;;  %s7365_s22 = smov 20  }
  0x13   :  { %8219 = sst [smem:[#allocation5_spill]] %s7463_s30  ;;  %s7366_s28 = smov 21  }
  0x14   :  { %s7498_s30 = sld [smem:[%s8208_s0 + %s7364_s15]]   ;;  %s7368_s15 = smov 23  }
  0x15   :  { %8220 = sst [smem:[#allocation6_spill]] %s7473_s12 }
  0x16   :  { %s7493_s12 = sld [smem:[%s8208_s0 + %s7363_s7]]   ;;  %s7367_s7 = smov 22  }
  0x17   :  { %8221 = sst [smem:[#allocation7_spill]] %s7483_s27 }
  0x18   :  { %8222 = sst [smem:[#allocation8_spill]] %s7488_s4 }
  0x19   :  { %s7503_s27 = sld [smem:[%s8208_s0 + %s7365_s22]]   ;;  %s7369_s22 = smov 24  }
  0x1a   :  { %8224 = sst [smem:[#allocation10_spill]] %s7498_s30 }
  0x1b   :  { %s7508_s4 = sld [smem:[%s8208_s0 + %s7366_s28]]   ;;  %s7370_s28 = smov 25  }
  0x1c   :  { %8223 = sst [smem:[#allocation9_spill]] %s7493_s12 }
  0x1d   :  { %s7513_s12 = sld [smem:[%s8208_s0 + %s7367_s7]]   ;;  %s7371_s7 = smov 26  }
  0x1e   :  { %s7518_s30 = sld [smem:[%s8208_s0 + %s7368_s15]]   ;;  %s7372_s15 = smov 27  }
  0x1f   :  { %8225 = sst [smem:[#allocation11_spill]] %s7503_s27 }
  0x20   :  { %s7523_s27 = sld [smem:[%s8208_s0 + %s7369_s22]]   ;;  %s7373_s22 = smov 28  }
  0x21   :  { %8226 = sst [smem:[#allocation12_spill]] %s7508_s4 }
  0x22   :  { %s7528_s4 = sld [smem:[%s8208_s0 + %s7370_s28]]   ;;  %s7374_s28 = smov 29  }
  0x23   :  { %8227 = sst [smem:[#allocation13_spill]] %s7513_s12 }
  0x24   :  { %8228 = sst [smem:[#allocation14_spill]] %s7518_s30 }
  0x25   :  { %s7533_s12 = sld [smem:[%s8208_s0 + %s7371_s7]]   ;;  %s7375_s7 = smov 30  }
  0x26   :  { %8229 = sst [smem:[#allocation15_spill]] %s7523_s27 }
  0x27   :  { %s7538_s30 = sld [smem:[%s8208_s0 + %s7372_s15]]   ;;  %s7376_s15 = smov 31  }
  0x28   :  { %8230 = sst [smem:[#allocation16_spill]] %s7528_s4 }
  0x29   :  { %s7543_s27 = sld [smem:[%s8208_s0 + %s7373_s22]]   ;;  %s7377_s22 = smov 32  }
  0x2a   :  { %s7548_s4 = sld [smem:[%s8208_s0 + %s7374_s28]]   ;;  %s7378_s28 = smov 33  }
  0x2b   :  { %8231 = sst [smem:[#allocation17_spill]] %s7533_s12 }
  0x2c   :  { %s7553_s12 = sld [smem:[%s8208_s0 + %s7375_s7]]   ;;  %s7379_s7 = smov 34  }
  0x2d   :  { %8232 = sst [smem:[#allocation18_spill]] %s7538_s30 }
  0x2e   :  { %s7558_s30 = sld [smem:[%s8208_s0 + %s7376_s15]]   ;;  %s7380_s15 = smov 35  }
  0x2f   :  { %8233 = sst [smem:[#allocation19_spill]] %s7543_s27 }
  0x30   :  { %8234 = sst [smem:[#allocation20_spill]] %s7548_s4 }
  0x31   :  { %s7563_s27 = sld [smem:[%s8208_s0 + %s7377_s22]]   ;;  %s7381_s22 = smov 36  }
  0x32   :  { %8235 = sst [smem:[#allocation21_spill]] %s7553_s12 }
  0x33   :  { %s7568_s4 = sld [smem:[%s8208_s0 + %s7378_s28]]   ;;  %s7382_s28 = smov 37  }
  0x34   :  { %8236 = sst [smem:[#allocation22_spill]] %s7558_s30 }
  0x35   :  { %s7573_s12 = sld [smem:[%s8208_s0 + %s7379_s7]]   ;;  %s7383_s7 = smov 38  }
  0x36   :  { %s7578_s30 = sld [smem:[%s8208_s0 + %s7380_s15]]   ;;  %s7384_s15 = smov 39  }
  0x37   :  { %8237 = sst [smem:[#allocation23_spill]] %s7563_s27 }
  0x38   :  { %s7583_s27 = sld [smem:[%s8208_s0 + %s7381_s22]]   ;;  %s7385_s22 = smov 40  }
  0x39   :  { %8238 = sst [smem:[#allocation24_spill]] %s7568_s4 }
  0x3a   :  { %s7588_s4 = sld [smem:[%s8208_s0 + %s7382_s28]]   ;;  %s7386_s28 = smov 41  }
  0x3b   :  { %8239 = sst [smem:[#allocation25_spill]] %s7573_s12 }
  0x3c   :  { %8240 = sst [smem:[#allocation26_spill]] %s7578_s30 }
  0x3d   :  { %s7593_s12 = sld [smem:[%s8208_s0 + %s7383_s7]]   ;;  %s7387_s7 = smov 42  }
  0x3e   :  { %8241 = sst [smem:[#allocation27_spill]] %s7583_s27 }
  0x3f   :  { %s7598_s30 = sld [smem:[%s8208_s0 + %s7384_s15]]  }
  0x40   :  { %8242 = sst [smem:[#allocation28_spill]] %s7588_s4 }
  0x41   :  { %s7603_s27 = sld [smem:[%s8208_s0 + %s7385_s22]]  }
  0x42   :  { %s7608_s4 = sld [smem:[%s8208_s0 + %s7386_s28]]  }
  0x43   :  { %8243 = sst [smem:[#allocation29_spill]] %s7593_s12 }
  0x44   :  { %s7613_s12 = sld [smem:[%s8208_s0 + %s7387_s7]]  }
  0x45   :  { %v176_v0 = vld [vmem:[%s7408_s9] sm:$0xff]  ;;  %v177_v1 = vld [vmem:[%s7408_s9 + $0x8] sm:$0xff]  ;;  %vm186_vm0 = vcmask 195584   ;;  %v178_v3 = vld [vmem:[%s7408_s9 + $0x10] sm:$0xff] }
  0x46   :  { %v6761_v2 = vpack.c.bf16 %v177_v1, %v176_v0  ;;  %v174_v4 = vld [vmem:[%s7403_s5] sm:$0xff]  ;;  %v269_v6 = vld [vmem:[%s7418_s17 + $0x8] sm:$0xff] }
  0x47   :  { %6171 = vmatprep.mubr.msk.f32.mxu1 %vm186_vm0, %v174_v4  ;;  %v268_v5 = vld [vmem:[%s7418_s17] sm:$0xff] }
  0x48   :  { %91 = vsyncpa [#allocation3], 0  ;;  %6762 = vmatprep.subr.bf16.mxu1 %v6761_v2  ;;  %v6765_v7 = vpack.c.bf16 %v269_v6, %v268_v5  ;;  %v175_v8 = vld [vmem:[%s7403_s5 + $0x8] sm:$0xff]  ;;  %v270_v9 = vld [vmem:[%s7418_s17 + $0x10] sm:$0xff]  ;;  %vm279_vm1 = vcmask 261120   ;;  %vm1321_vm2 = vcmask 64512  }
  0x49   :  { %6764 = vmatpush3.bf16.msra.mxu1 %v6761_v2  ;;  %v271_v10 = vld [vmem:[%s7418_s17 + $0x18] sm:$0xff]  ;;  %v367_v12 = vld [vmem:[%s7438_s3] sm:$0xff]  ;;  %v368_v13 = vld [vmem:[%s7438_s3 + $0x8] sm:$0xff]  ;;  %vm1670_vm4 = vcmask 130048   ;;  %s8246_s0 = sld [smem:[#allocation5_spill]]  ;;  %s8247_s5 = sld [smem:[#allocation6_spill]] }
  0x4a   :  { %6169 = vmatprep.subr.mxu1 %v178_v3  ;;  %v6769_v11 = vpack.c.bf16 %v271_v10, %v270_v9  ;;  %v371_v14 = vld [vmem:[%s7438_s3 + $0x20] sm:$0xff]  ;;  %v6773_v15 = vpack.c.bf16 %v368_v13, %v367_v12  ;;  %v372_v16 = vld [vmem:[%s7438_s3 + $0x28] sm:$0xff]  ;;  %v369_v23 = vld [vmem:[%s7438_s3 + $0x10] sm:$0xff]  ;;  %s8248_s9 = sld [smem:[#allocation7_spill]]  ;;  %vm2581_vm5 = vcmask 523264   ;;  %s8250_s17 = sld [smem:[#allocation11_spill]] }
  0x4b   :  { %v6781_v17 = vpack.c.bf16 %v372_v16, %v371_v14  ;;  %v5661_v18 = vld [vmem:[%s7413_s13] ss:$0 sm:$0xff]  ;;  %v370_v24 = vld [vmem:[%s7438_s3 + $0x18] sm:$0xff]  ;;  %v373_v25 = vld [vmem:[%s7438_s3 + $0x30] sm:$0xff]  ;;  %s8249_s13 = sld [smem:[#allocation10_spill]]  ;;  %s8261_s15 = sld [smem:[#allocation22_spill]] }
  0x4c   :  { %6774 = vmatprep.subr.bf16.mxu0 %v6773_v15  ;;  %v6777_v26 = vpack.c.bf16 %v370_v24, %v369_v23  ;;  %v374_v27 = vld [vmem:[%s7438_s3 + $0x38] sm:$0xff]  ;;  %v375_v29 = vld [vmem:[%s7438_s3 + $0x40] sm:$0xff]  ;;  %v376_v30 = vld [vmem:[%s7438_s3 + $0x48] sm:$0xff]  ;;  %s8262_s16 = sld [smem:[#allocation20_spill]]  ;;  %s8263_s18 = sld [smem:[#allocation21_spill]]  ;;  %vm5050_vm6 = vcmask 1040384  }
  0x4d   :  { %6170 = vmatpush3.msra.mxu1 %v178_v3  ;;  %6776 = vmatpush3.bf16.msra.mxu0 %v6773_v15  ;;  %v6785_v28 = vpack.c.bf16 %v374_v27, %v373_v25  ;;  %v6789_v31 = vpack.c.bf16 %v376_v30, %v375_v29  ;;  %v379_v32 = vld [vmem:[%s7438_s3 + $0x60] sm:$0xff]  ;;  %v380_v33 = vld [vmem:[%s7438_s3 + $0x68] sm:$0xff]  ;;  %v377_v42 = vld [vmem:[%s7438_s3 + $0x50] sm:$0xff]  ;;  %s8264_s22 = sld [smem:[#allocation24_spill]]  ;;  %s7388_s23 = smov 32   ;;  %vm5112_vm7 = vcmask 785408  }
  0x4e   :  { %6172 = vmatmul.mubr.msk.f32.vlgmr.msra.gmra.mrb[0].mxu1 %vm186_vm0, %v175_v8  ;;  %6766 = vmatprep.subr.bf16.mxu1 %v6765_v7  ;;  %v6797_v34 = vpack.c.bf16 %v380_v33, %v379_v32  ;;  %v5664_v35 = vld [vmem:[%s7423_s21] ss:$0 sm:$0xff]  ;;  %v362_v40 = vld [vmem:[%s7428_s25 + $0x8] sm:$0xff]  ;;  %v378_v43 = vld [vmem:[%s7438_s3 + $0x58] sm:$0xff]  ;;  %s8251_s21 = sld [smem:[#allocation8_spill]]  ;;  %s7390_s26 = smov 96  }
  0x4f   :  { %6768 = vmatpush3.bf16.msra.mxu1 %v6765_v7  ;;  %6778 = vmatprep.subr.bf16.mxu0 %v6777_v26  ;;  %v361_v39 = vld [vmem:[%s7428_s25] sm:$0xff]  ;;  %v381_v44 = vld [vmem:[%s7438_s3 + $0x70] sm:$0xff]  ;;  %v382_v45 = vld [vmem:[%s7438_s3 + $0x78] sm:$0xff]  ;;  %v6793_v49 = vpack.c.bf16 %v378_v43, %v377_v42  ;;  %s8252_s25 = sld [smem:[#allocation9_spill]]  ;;  %s8253_s3 = sld [smem:[#allocation12_spill]]  ;;  %vm7392_vm8 = vmmov 0  }
  0x50   :  { %6770 = vmatprep.subr.bf16.mxu1 %v6769_v11  ;;  %v689_v48 = vld [vmem:[%s7443_s8] sm:$0xff]  ;;  %v6801_v50 = vpack.c.bf16 %v382_v45, %v381_v44  ;;  %v690_v51 = vld [vmem:[%s7443_s8 + $0x8] sm:$0xff]  ;;  %v691_v56 = vld [vmem:[%s7443_s8 + $0x10] sm:$0xff]  ;;  %s7391_s28 = smov 64   ;;  %s8265_s1 = sld [smem:[#allocation26_spill]] }
  0x51   :  { %6780 = vmatpush3.bf16.msra.mxu0 %v6777_v26  ;;  %v693_v52 = vld [vmem:[%s7443_s8 + $0x20] sm:$0xff]  ;;  %v694_v53 = vld [vmem:[%s7443_s8 + $0x28] sm:$0xff]  ;;  %v6805_v54 = vpack.c.bf16 %v690_v51, %v689_v48  ;;  %v692_v57 = vld [vmem:[%s7443_s8 + $0x18] sm:$0xff]  ;;  %s8266_s2 = sld [smem:[#allocation23_spill]]  ;;  %s8268_s7 = sld [smem:[#allocation28_spill]] }
  0x52   :  { %6790 = vmatprep.subr.bf16.mxu0 %v6789_v31  ;;  %v6813_v55 = vpack.c.bf16 %v694_v53, %v693_v52  ;;  %v695_v58 = vld [vmem:[%s7443_s8 + $0x30] sm:$0xff]  ;;  %v696_v59 = vld [vmem:[%s7443_s8 + $0x38] sm:$0xff]  ;;  %v6809_v60 = vpack.c.bf16 %v692_v57, %v691_v56  ;;  %v697_v62 = vld [vmem:[%s7443_s8 + $0x40] sm:$0xff]  ;;  %s8269_s10 = sld [smem:[#allocation27_spill]]  ;;  %s8270_s11 = sld [smem:[#allocation29_spill]] }
  0x53   :  { %6772 = vmatpush3.bf16.msra.mxu1 %v6769_v11  ;;  %v6817_v61 = vpack.c.bf16 %v696_v59, %v695_v58  ;;  %v698_v63 = vld [vmem:[%s7443_s8 + $0x48] sm:$0xff]  ;;  %v701_v0 = vld [vmem:[%s7443_s8 + $0x60] sm:$0xff]  ;;  %v699_v4 = vld [vmem:[%s7443_s8 + $0x50] sm:$0xff] }
  0x54   :  { %6782 = vmatprep.subr.bf16.mxu1 %v6781_v17  ;;  %v702_v1 = vld [vmem:[%s7443_s8 + $0x68] sm:$0xff]  ;;  %v6821_v2 = vpack.c.bf16 %v698_v63, %v697_v62  ;;  %v700_v5 = vld [vmem:[%s7443_s8 + $0x58] sm:$0xff]  ;;  %v703_v6 = vld [vmem:[%s7443_s8 + $0x70] sm:$0xff] }
  0x55   :  { %v6829_v3 = vpack.c.bf16 %v702_v1, %v701_v0  ;;  %v704_v7 = vld [vmem:[%s7443_s8 + $0x78] sm:$0xff]  ;;  %v6825_v8 = vpack.c.bf16 %v700_v5, %v699_v4  ;;  %v1005_v9 = vld [vmem:[%s7448_s14] sm:$0xff]  ;;  %v1006_v10 = vld [vmem:[%s7448_s14 + $0x8] sm:$0xff]  ;;  %s8255_s8 = sld [smem:[#allocation16_spill]] }
  0x56   :  { %v6833_v11 = vpack.c.bf16 %v704_v7, %v703_v6  ;;  %v1009_v12 = vld [vmem:[%s7448_s14 + $0x20] sm:$0xff]  ;;  %v1010_v13 = vld [vmem:[%s7448_s14 + $0x28] sm:$0xff]  ;;  %v6837_v14 = vpack.c.bf16 %v1006_v10, %v1005_v9  ;;  %v1007_v16 = vld [vmem:[%s7448_s14 + $0x10] sm:$0xff] }
  0x57   :  { %v6845_v15 = vpack.c.bf16 %v1010_v13, %v1009_v12  ;;  %v1017_v24 = vld [vmem:[%s7448_s14 + $0x60] sm:$0xff]  ;;  %v1018_v25 = vld [vmem:[%s7448_s14 + $0x68] sm:$0xff]  ;;  %v1016_v29 = vld [vmem:[%s7448_s14 + $0x58] sm:$0xff] }
  0x58   :  { %v6861_v27 = vpack.c.bf16 %v1018_v25, %v1017_v24  ;;  %v1019_v30 = vld [vmem:[%s7448_s14 + $0x70] sm:$0xff]  ;;  %vm7734_vm3 = vmpackc.low %vm1321_vm2, %vm1321_vm2  ;;  %v7767_v5 = vld [vmem:[%s7433_s29 + $0x8] sm:$0xff] }
  0x59   :  { %v7770_v7 = vld [vmem:[%s7433_s29] sm:$0xff] }
 0x121   :  { %v6173_v19 = vpop.f32.mrb[0].mxu1 }
 0x122   :  { %v259_v20 = vpop.f32.mrb[1].mxu1  ;;  %v265_v22 = vadd.f32 %v6173_v19, %v5661_v18  ;;  %v1012_v19 = vld [vmem:[%s7448_s14 + $0x38] sm:$0xff] }
 0x123   :  { %v260_v21 = vadd.f32 %v5661_v18, %v259_v20  ;;  %v1011_v18 = vld [vmem:[%s7448_s14 + $0x30] sm:$0xff] }
 0x124   :  { %v6849_v23 = vpack.c.bf16 %v1012_v19, %v1011_v18 }
 0x125   :  { %6182 = vmatprep.mubr.msk.f32.mxu1 %vm279_vm1, %v260_v21  ;;  %v1013_v21 = vld [vmem:[%s7448_s14 + $0x40] sm:$0xff] }
 0x126   :  { %6183 = vmatmul.mubr.msk.f32.vlgmr.msra.gmra.mrb[2].mxu1 %vm279_vm1, %v265_v22  ;;  %v1014_v22 = vld [vmem:[%s7448_s14 + $0x48] sm:$0xff] }
 0x127   :  { %6784 = vmatpush3.bf16.msra.mxu1 %v6781_v17  ;;  %v1008_v17 = vld [vmem:[%s7448_s14 + $0x18] sm:$0xff]  ;;  %v6853_v26 = vpack.c.bf16 %v1014_v22, %v1013_v21 }
 0x128   :  { %6786 = vmatprep.subr.bf16.mxu1 %v6785_v28  ;;  %v6841_v20 = vpack.c.bf16 %v1008_v17, %v1007_v16 }
 0x12b   :  { %6788 = vmatpush3.bf16.msra.mxu1 %v6785_v28  ;;  %v1015_v28 = vld [vmem:[%s7448_s14 + $0x50] sm:$0xff] }
 0x12c   :  { %6798 = vmatprep.subr.bf16.mxu1 %v6797_v34  ;;  %v6857_v32 = vpack.c.bf16 %v1016_v29, %v1015_v28 }
 0x1f9   :  { %v6184_v36 = vpop.f32.mrb[2].mxu1 }
 0x1fa   :  { %v358_v37 = vadd.f32 %v6184_v36, %v5664_v35  ;;  %v352_v38 = vpop.f32.mrb[3].mxu1 }
 0x1fb   :  { %v353_v41 = vadd.f32 %v5664_v35, %v352_v38 }
 0x1fc   :  { %v7648_v47 = vadd.f32 %v362_v40, %v358_v37 }
 0x1fd   :  { %v7646_v46 = vadd.f32 %v361_v39, %v353_v41 }
 0x1ff   :  { %6193 = vmatprep.mubr.msk.f32.mxu0 %vm279_vm1, %v7646_v46  ;;  %6204 = vmatprep.mubr.msk.f32.mxu1 %vm279_vm1, %v7646_v46 }
 0x200   :  { %6194 = vmatmul.mubr.msk.f32.vlgmr.msra.gmra.mrb[0].mxu0 %vm279_vm1, %v7648_v47  ;;  %6205 = vmatmul.mubr.msk.f32.vlgmr.msra.gmra.mrb[4].mxu1 %vm279_vm1, %v7648_v47 }
 0x201   :  { %6792 = vmatpush3.bf16.msra.mxu0 %v6789_v31  ;;  %6800 = vmatpush3.bf16.msra.mxu1 %v6797_v34  ;;  %v1020_v31 = vld [vmem:[%s7448_s14 + $0x78] sm:$0xff]  ;;  %s8256_s14 = sld [smem:[#allocation18_spill]] }
 0x202   :  { %6215 = vmatprep.mubr.msk.f32.mxu0 %vm279_vm1, %v7646_v46  ;;  %6226 = vmatprep.mubr.msk.f32.mxu1 %vm279_vm1, %v7646_v46  ;;  %v6865_v33 = vpack.c.bf16 %v1020_v31, %v1019_v30 }
 0x203   :  { %6794 = vmatprep.subr.bf16.mxu0 %v6793_v49  ;;  %6802 = vmatprep.subr.bf16.mxu1 %v6801_v50 }
 0x205   :  { %6796 = vmatpush3.bf16.msra.mxu0 %v6793_v49  ;;  %6804 = vmatpush3.bf16.msra.mxu1 %v6801_v50 }
 0x206   :  { %6806 = vmatprep.subr.bf16.mxu0 %v6805_v54  ;;  %6814 = vmatprep.subr.bf16.mxu1 %v6813_v55 }
 0x208   :  { %6216 = vmatmul.mubr.msk.f32.vlgmr.msra.gmra.mrb[2].mxu0 %vm279_vm1, %v7648_v47  ;;  %6227 = vmatmul.mubr.msk.f32.vlgmr.msra.gmra.mrb[6].mxu1 %vm279_vm1, %v7648_v47 }
 0x209   :  { %6808 = vmatpush3.bf16.msra.mxu0 %v6805_v54  ;;  %6237 = vmatprep.mubr.msk.f32.mxu0 %vm279_vm1, %v7646_v46 }
 0x20a   :  { %6816 = vmatpush3.bf16.msra.mxu1 %v6813_v55  ;;  %6248 = vmatprep.mubr.msk.f32.mxu1 %vm279_vm1, %v7646_v46 }
 0x20b   :  { %6810 = vmatprep.subr.bf16.mxu0 %v6809_v60  ;;  %6818 = vmatprep.subr.bf16.mxu1 %v6817_v61 }
 0x20d   :  { %6812 = vmatpush3.bf16.msra.mxu0 %v6809_v60 }
 0x20e   :  { %6820 = vmatpush3.bf16.msra.mxu1 %v6817_v61  ;;  %6822 = vmatprep.subr.bf16.mxu0 %v6821_v2 }
 0x20f   :  { %6830 = vmatprep.subr.bf16.mxu1 %v6829_v3 }
 0x210   :  { %6238 = vmatmul.mubr.msk.f32.vlgmr.msra.gmra.mrb[4].mxu0 %vm279_vm1, %v7648_v47 }
 0x211   :  { %6249 = vmatmul.mubr.msk.f32.vlgmr.msra.gmra.mrb[8].mxu1 %vm279_vm1, %v7648_v47  ;;  %6824 = vmatpush3.bf16.msra.mxu0 %v6821_v2 }
 0x212   :  { %6259 = vmatprep.mubr.msk.f32.mxu0 %vm279_vm1, %v7646_v46  ;;  %6832 = vmatpush3.bf16.msra.mxu1 %v6829_v3 }
 0x213   :  { %6270 = vmatprep.mubr.msk.f32.mxu1 %vm279_vm1, %v7646_v46  ;;  %6826 = vmatprep.subr.bf16.mxu0 %v6825_v8 }
 0x214   :  { %6834 = vmatprep.subr.bf16.mxu1 %v6833_v11 }
 0x215   :  { %6828 = vmatpush3.bf16.msra.mxu0 %v6825_v8 }
 0x216   :  { %6836 = vmatpush3.bf16.msra.mxu1 %v6833_v11  ;;  %6838 = vmatprep.subr.bf16.mxu0 %v6837_v14 }
 0x217   :  { %6846 = vmatprep.subr.bf16.mxu1 %v6845_v15 }
 0x218   :  { %6260 = vmatmul.mubr.msk.f32.vlgmr.msra.gmra.mrb[6].mxu0 %vm279_vm1, %v7648_v47 }
 0x219   :  { %6271 = vmatmul.mubr.msk.f32.vlgmr.msra.gmra.mrb[10].mxu1 %vm279_vm1, %v7648_v47  ;;  %6840 = vmatpush3.bf16.msra.mxu0 %v6837_v14 }
 0x21a   :  { %6281 = vmatprep.mubr.msk.f32.mxu0 %vm279_vm1, %v7646_v46  ;;  %6848 = vmatpush3.bf16.msra.mxu1 %v6845_v15 }
 0x21b   :  { %6292 = vmatprep.mubr.msk.f32.mxu1 %vm279_vm1, %v7646_v46  ;;  %6842 = vmatprep.subr.bf16.mxu0 %v6841_v20 }
 0x21c   :  { %6850 = vmatprep.subr.bf16.mxu1 %v6849_v23 }
 0x21d   :  { %6844 = vmatpush3.bf16.msra.mxu0 %v6841_v20 }
 0x21e   :  { %6852 = vmatpush3.bf16.msra.mxu1 %v6849_v23  ;;  %6854 = vmatprep.subr.bf16.mxu0 %v6853_v26 }
 0x21f   :  { %6862 = vmatprep.subr.bf16.mxu1 %v6861_v27 }
 0x220   :  { %6282 = vmatmul.mubr.msk.f32.vlgmr.msra.gmra.mrb[8].mxu0 %vm279_vm1, %v7648_v47 }
 0x221   :  { %6293 = vmatmul.mubr.msk.f32.vlgmr.msra.gmra.mrb[12].mxu1 %vm279_vm1, %v7648_v47  ;;  %6856 = vmatpush3.bf16.msra.mxu0 %v6853_v26 }
 0x222   :  { %6303 = vmatprep.mubr.msk.f32.mxu0 %vm279_vm1, %v7646_v46  ;;  %6864 = vmatpush3.bf16.msra.mxu1 %v6861_v27 }
 0x223   :  { %6314 = vmatprep.mubr.msk.f32.mxu1 %vm279_vm1, %v7646_v46  ;;  %6858 = vmatprep.subr.bf16.mxu0 %v6857_v32 }
 0x224   :  { %6866 = vmatprep.subr.bf16.mxu1 %v6865_v33 }
 0x225   :  { %6860 = vmatpush3.bf16.msra.mxu0 %v6857_v32 }
 0x226   :  { %6868 = vmatpush3.bf16.msra.mxu1 %v6865_v33 }
 0x228   :  { %6304 = vmatmul.mubr.msk.f32.vlgmr.msra.gmra.mrb[10].mxu0 %vm279_vm1, %v7648_v47 }
 0x229   :  { %6315 = vmatmul.mubr.msk.f32.vlgmr.msra.gmra.mrb[14].mxu1 %vm279_vm1, %v7648_v47 }
 0x2d3   :  { %v6195_v34 = vpop.f32.mrb[0].mxu0  ;;  %v6206_v35 = vpop.f32.mrb[4].mxu1 }
 0x2d4   :  { %v455_v36 = vpop.f32.mrb[1].mxu0  ;;  %v530_v37 = vpop.f32.mrb[5].mxu1 }
 0x2d5   :  { %6321 = vmatprep.mubr.msk.f32.mxu0 %vm1321_vm2, %v455_v36  ;;  %6328 = vmatprep.mubr.msk.f32.mxu1 %vm1321_vm2, %v530_v37 }
 0x2db   :  { %v6217_v38 = vpop.f32.mrb[2].mxu0  ;;  %v6228_v39 = vpop.f32.mrb[6].mxu1 }
 0x2dc   :  { %v605_v40 = vpop.f32.mrb[3].mxu0  ;;  %v680_v41 = vpop.f32.mrb[7].mxu1 }
 0x2e3   :  { %v6239_v42 = vpop.f32.mrb[4].mxu0 }
 0x2e4   :  { %v6250_v43 = vpop.f32.mrb[8].mxu1  ;;  %v771_v44 = vpop.f32.mrb[5].mxu0 }
 0x2e5   :  { %v6869_v48 = vpack.c.bf16 %v6239_v42, %v771_v44  ;;  %v846_v49 = vpop.f32.mrb[9].mxu1 }
 0x2e6   :  { %v6875_v50 = vpack.c.bf16 %v6250_v43, %v846_v49 }
 0x2e7   :  { %6871 = vmatprep.subr.msk.bf16.mxu0 %vm7734_vm3, %v6869_v48 }
 0x2e8   :  { %6877 = vmatprep.subr.msk.bf16.mxu1 %vm7734_vm3, %v6875_v50  ;;  %6874 = vmatpush3.bf16.xpose.msk.msra.mxu0 %vm7734_vm3, %v6869_v48 }
 0x2e9   :  { %6880 = vmatpush3.bf16.xpose.msk.msra.mxu1 %vm7734_vm3, %v6875_v50 }
 0x2eb   :  { %v6261_v51 = vpop.f32.mrb[6].mxu0 }
 0x2ec   :  { %v6272_v52 = vpop.f32.mrb[10].mxu1  ;;  %v921_v53 = vpop.f32.mrb[7].mxu0 }
 0x2ed   :  { %v6881_v54 = vpack.c.bf16 %v6261_v51, %v921_v53  ;;  %v996_v55 = vpop.f32.mrb[11].mxu1 }
 0x2ee   :  { %v6887_v56 = vpack.c.bf16 %v6272_v52, %v996_v55 }
 0x2ef   :  { %6322 = vmatmul.mubr.msk.f32.vlgmr.msra.gmra.mrb[12].mxu0 %vm1321_vm2, %v6195_v34  ;;  %6883 = vmatprep.subr.msk.bf16.mxu0 %vm7734_vm3, %v6881_v54 }
 0x2f0   :  { %6329 = vmatmul.mubr.msk.f32.vlgmr.msra.gmra.mrb[16].mxu1 %vm1321_vm2, %v6206_v35  ;;  %6889 = vmatprep.subr.msk.bf16.mxu1 %vm7734_vm3, %v6887_v56 }
 0x2f1   :  { %6886 = vmatpush3.bf16.xpose.msk.msra.mxu0 %vm7734_vm3, %v6881_v54  ;;  %6335 = vmatprep.mubr.msk.f32.mxu0 %vm1321_vm2, %v605_v40 }
 0x2f2   :  { %6892 = vmatpush3.bf16.xpose.msk.msra.mxu1 %vm7734_vm3, %v6887_v56  ;;  %6342 = vmatprep.mubr.msk.f32.mxu1 %vm1321_vm2, %v680_v41 }
 0x2f3   :  { %v6283_v57 = vpop.f32.mrb[8].mxu0 }
 0x2f4   :  { %v6294_v58 = vpop.f32.mrb[12].mxu1  ;;  %v1087_v59 = vpop.f32.mrb[9].mxu0 }
 0x2f5   :  { %v6893_v60 = vpack.c.bf16 %v6283_v57, %v1087_v59  ;;  %v1162_v61 = vpop.f32.mrb[13].mxu1 }
 0x2f6   :  { %v6897_v62 = vpack.c.bf16 %v6294_v58, %v1162_v61 }
 0x2f7   :  { %6894 = vmatprep.subr.bf16.mxu0 %v6893_v60 }
 0x2f8   :  { %6336 = vmatmul.mubr.msk.f32.vlgmr.msra.gmra.mrb[14].mxu0 %vm1321_vm2, %v6217_v38  ;;  %6898 = vmatprep.subr.bf16.mxu1 %v6897_v62 }
 0x2f9   :  { %6343 = vmatmul.mubr.msk.f32.vlgmr.msra.gmra.mrb[18].mxu1 %vm1321_vm2, %v6228_v39  ;;  %6896 = vmatpush3.bf16.msra.mxu0 %v6893_v60 }
 0x2fa   :  { %6900 = vmatpush3.bf16.msra.mxu1 %v6897_v62 }
 0x2fb   :  { %v6305_v63 = vpop.f32.mrb[10].mxu0 }
 0x2fc   :  { %v6316_v0 = vpop.f32.mrb[14].mxu1  ;;  %v1237_v1 = vpop.f32.mrb[11].mxu0 }
 0x2fd   :  { %v7760_v2 = vpack.c.bf16 %v6305_v63, %v1237_v1  ;;  %v1312_v3 = vpop.f32.mrb[15].mxu1 }
 0x2fe   :  { %v7762_v4 = vpack.c.bf16 %v6316_v0, %v1312_v3 }
 0x2ff   :  { %6902 = vmatprep.subr.bf16.mxu0 %v7760_v2 }
 0x300   :  { %6906 = vmatprep.subr.bf16.mxu1 %v7762_v4 }
 0x3c2   :  { %v6323_v6 = vpop.f32.mrb[12].mxu0 }
 0x3c3   :  { %v1406_v8 = vadd.f32 %v6323_v6, %v7767_v5  ;;  %v6330_v9 = vpop.f32.mrb[16].mxu1  ;;  %v1400_v10 = vpop.f32.mrb[13].mxu0 }
 0x3c4   :  { %v1493_v11 = vadd.f32 %v6330_v9, %v7767_v5  ;;  %v1487_v12 = vpop.f32.mrb[17].mxu1  ;;  %v1401_v13 = vadd.f32 %v1400_v10, %v7770_v7 }
 0x3c5   :  { %v1674_v14 = vsel %vm1670_vm4, %v1406_v8, -inf  ;;  %v1488_v15 = vadd.f32 %v1487_v12, %v7770_v7 }
 0x3c6   :  { %v1680_v16 = vsel %vm1670_vm4, %v1493_v11, -inf  ;;  %1675 = vmax.xlane.f32.xlu0 %v1674_v14  ;;  %v1671_v17 = vsel %vm1670_vm4, %v1401_v13, -inf }
 0x3c7   :  { %1681 = vmax.xlane.f32.xlu1 %v1680_v16  ;;  %v1677_v18 = vsel %vm1670_vm4, %v1488_v15, -inf }
 0x3ca   :  { %1672 = vmax.xlane.f32.xlu0 %v1671_v17 }
 0x3cb   :  { %1678 = vmax.xlane.f32.xlu1 %v1677_v18  ;;  %v6337_v19 = vpop.f32.mrb[14].mxu0 }
 0x3cc   :  { %v6344_v20 = vpop.f32.mrb[18].mxu1  ;;  %v1580_v21 = vadd.f32 %v6337_v19, %v7767_v5  ;;  %v1574_v22 = vpop.f32.mrb[15].mxu0 }
 0x3cd   :  { %v1575_v23 = vadd.f32 %v1574_v22, %v7770_v7  ;;  %v1661_v24 = vpop.f32.mrb[19].mxu1  ;;  %v1667_v25 = vadd.f32 %v6344_v20, %v7767_v5 }
 0x3ce   :  { %v1686_v26 = vsel %vm1670_vm4, %v1580_v21, -inf  ;;  %v1662_v27 = vadd.f32 %v1661_v24, %v7770_v7 }
 0x3cf   :  { %1687 = vmax.xlane.f32.xlu1 %v1686_v26  ;;  %v1683_v28 = vsel %vm1670_vm4, %v1575_v23, -inf  ;;  %v1692_v29 = vsel %vm1670_vm4, %v1667_v25, -inf }
 0x3d0   :  { %1684 = vmax.xlane.f32.xlu0 %v1683_v28  ;;  %v1689_v30 = vsel %vm1670_vm4, %v1662_v27, -inf }
 0x3d3   :  { %1693 = vmax.xlane.f32.xlu1 %v1692_v29 }
 0x3d4   :  { %1690 = vmax.xlane.f32.xlu0 %v1689_v30 }
 0x453   :  { %v1676_v31 = vpop.xlane.xlu0 %1675 }
 0x454   :  { %v1682_v32 = vpop.xlane.xlu1 %1681  ;;  %v1696_v33 = vsub.f32 %v1406_v8, %v1676_v31 }
 0x455   :  { %v1698_v34 = vsub.f32 %v1493_v11, %v1682_v32 }
 0x456   :  { %v1705_v35 = vmul.f32 1.442695, %v1696_v33 }
 0x457   :  { %v1709_v36 = vmul.f32 1.442695, %v1698_v34  ;;  %v1673_v37 = vpop.xlane.xlu0 %1672 }
 0x458   :  { %7240 = vpow2.f32 %v1705_v35  ;;  %v1679_v38 = vpop.xlane.xlu1 %1678  ;;  %v1695_v39 = vsub.f32 %v1401_v13, %v1673_v37  ;;  %v2083_v37 = vld [vmem:[%s7453_s19] sm:$0xff] }
 0x459   :  { %v1697_v40 = vsub.f32 %v1488_v15, %v1679_v38  ;;  %7242 = vpow2.f32 %v1709_v36  ;;  %v2085_v38 = vld [vmem:[%s7453_s19 + $0x10] sm:$0xff] }
 0x45a   :  { %v1703_v41 = vmul.f32 1.442695, %v1695_v39  ;;  %v2086_v39 = vld [vmem:[%s7453_s19 + $0x18] sm:$0xff] }
 0x45b   :  { %v1707_v42 = vmul.f32 1.442695, %v1697_v40 }
 0x45c   :  { %7244 = vpow2.f32 %v1703_v41  ;;  %v1688_v43 = vpop.xlane.xlu1 %1687 }
 0x45d   :  { %v1700_v44 = vsub.f32 %v1580_v21, %v1688_v43  ;;  %v1685_v48 = vpop.xlane.xlu0 %1684  ;;  %7246 = vpow2.f32 %v1707_v42 }
 0x45e   :  { %v1699_v49 = vsub.f32 %v1575_v23, %v1685_v48 }
 0x45f   :  { %v1713_v50 = vmul.f32 1.442695, %v1700_v44 }
 0x460   :  { %v1711_v51 = vmul.f32 1.442695, %v1699_v49  ;;  %v1694_v52 = vpop.xlane.xlu1 %1693 }
 0x461   :  { %7248 = vpow2.f32 %v1713_v50  ;;  %v1702_v53 = vsub.f32 %v1667_v25, %v1694_v52  ;;  %v1691_v54 = vpop.xlane.xlu0 %1690 }
 0x462   :  { %v7241_v55 = vpop.eup %7240  ;;  %7250 = vpow2.f32 %v1711_v51  ;;  %v1701_v56 = vsub.f32 %v1662_v27, %v1691_v54 }
 0x463   :  { %v1717_v57 = vmul.f32 1.442695, %v1702_v53  ;;  %v1722_v58 = vsel %vm1670_vm4, %v7241_v55, 0.0  ;;  %v7243_v59 = vpop.eup %7242 }
 0x464   :  { %v1715_v60 = vmul.f32 1.442695, %v1701_v56  ;;  %1723 = vadd.xlane.f32.xlu1 %v1722_v58  ;;  %v1728_v62 = vsel %vm1670_vm4, %v7243_v59, 0.0 }
 0x465   :  { %7252 = vpow2.f32 %v1717_v57 }
 0x466   :  { %v7245_v61 = vpop.eup %7244  ;;  %7254 = vpow2.f32 %v1715_v60 }
 0x467   :  { %v1719_v63 = vsel %vm1670_vm4, %v7245_v61, 0.0  ;;  %v7247_v0 = vpop.eup %7246 }
 0x468   :  { %1729 = vadd.xlane.f32.xlu1 %v1728_v62  ;;  %1720 = vadd.xlane.f32.xlu0 %v1719_v63  ;;  %v1725_v3 = vsel %vm1670_vm4, %v7247_v0, 0.0 }
 0x46b   :  { %v7249_v1 = vpop.eup %7248 }
 0x46c   :  { %v7251_v6 = vpop.eup %7250  ;;  %v1734_v8 = vsel %vm1670_vm4, %v7249_v1, 0.0  ;;  %1726 = vadd.xlane.f32.xlu0 %v1725_v3 }
 0x46d   :  { %1735 = vadd.xlane.f32.xlu1 %v1734_v8  ;;  %v1731_v10 = vsel %vm1670_vm4, %v7251_v6, 0.0 }
 0x46f   :  { %v7253_v9 = vpop.eup %7252 }
 0x470   :  { %v7255_v11 = vpop.eup %7254  ;;  %v1740_v12 = vsel %vm1670_vm4, %v7253_v9, 0.0  ;;  %1732 = vadd.xlane.f32.xlu0 %v1731_v10 }
 0x471   :  { %1741 = vadd.xlane.f32.xlu1 %v1740_v12  ;;  %v1737_v13 = vsel %vm1670_vm4, %v7255_v11, 0.0 }
 0x474   :  { %1738 = vadd.xlane.f32.xlu0 %v1737_v13 }
 0x4f1   :  { %v1724_v14 = vpop.xlane.xlu1 %1723 }
 0x4f2   :  { %7256 = vrcp.f32 %v1724_v14 }
 0x4f5   :  { %v1730_v15 = vpop.xlane.xlu1 %1729  ;;  %v1721_v16 = vpop.xlane.xlu0 %1720 }
 0x4f6   :  { %7258 = vrcp.f32 %v1721_v16 }
 0x4f7   :  { %7260 = vrcp.f32 %v1730_v15 }
 0x4f9   :  { %v1727_v17 = vpop.xlane.xlu0 %1726 }
 0x4fa   :  { %v1736_v18 = vpop.xlane.xlu1 %1735  ;;  %7262 = vrcp.f32 %v1727_v17 }
 0x4fb   :  { %7264 = vrcp.f32 %v1736_v18 }
 0x4fc   :  { %v7257_v21 = vpop.eup %7256 }
 0x4fd   :  { %v1733_v19 = vpop.xlane.xlu0 %1732  ;;  %v1752_v26 = vmul.f32 %v7257_v21, %v7241_v55 }
 0x4fe   :  { %v1742_v20 = vpop.xlane.xlu1 %1741  ;;  %7266 = vrcp.f32 %v1733_v19 }
 0x4ff   :  { %7268 = vrcp.f32 %v1742_v20 }
 0x500   :  { %v7259_v22 = vpop.eup %7258 }
 0x501   :  { %v1739_v23 = vpop.xlane.xlu0 %1738  ;;  %v1751_v24 = vmul.f32 %v7259_v22, %v7245_v61  ;;  %v7261_v25 = vpop.eup %7260 }
 0x502   :  { %7270 = vrcp.f32 %v1739_v23  ;;  %v1754_v29 = vmul.f32 %v7261_v25, %v7243_v59  ;;  %v2472_v25 = vld [vmem:[%s7468_s6] sm:$0xff] }
 0x503   :  { %6349 = vmatprep.mubr.msk.f32.mxu0 %vm1670_vm4, %v1751_v24 }
 0x504   :  { %v7263_v27 = vpop.eup %7262  ;;  %6350 = vmatmul.mubr.msk.f32.vlgmr.msra.gmra.mrb[16].mxu0 %vm1670_vm4, %v1752_v26  ;;  %v2473_v26 = vld [vmem:[%s7468_s6 + $0x8] sm:$0xff] }
 0x505   :  { %v1753_v28 = vmul.f32 %v7263_v27, %v7247_v0  ;;  %6904 = vmatpush3.bf16.msra.mxu0 %v7760_v2  ;;  %v7265_v30 = vpop.eup %7264  ;;  %v6909_v27 = vpack.c.bf16 %v2473_v26, %v2472_v25  ;;  %v2710_v25 = vld [vmem:[%s8249_s13 + $0x8] sm:$0xff]  ;;  %v2717_v26 = vld [vmem:[%s8249_s13 + $0x40] sm:$0xff] }
 0x506   :  { %v1756_v33 = vmul.f32 %v7265_v30, %v7249_v1  ;;  %6373 = vmatprep.subr.mxu0 %v2083_v37 }
 0x507   :  { %6356 = vmatprep.mubr.msk.f32.mxu1 %vm1670_vm4, %v1753_v28  ;;  %v2474_v28 = vld [vmem:[%s7468_s6 + $0x10] sm:$0xff] }
 0x508   :  { %v7267_v31 = vpop.eup %7266  ;;  %6357 = vmatmul.mubr.msk.f32.vlgmr.msra.gmra.mrb[20].mxu1 %vm1670_vm4, %v1754_v29  ;;  %v2475_v29 = vld [vmem:[%s7468_s6 + $0x18] sm:$0xff]  ;;  %s8259_s6 = sld [smem:[#allocation17_spill]] }
 0x509   :  { %6908 = vmatpush3.bf16.msra.mxu1 %v7762_v4  ;;  %v1755_v32 = vmul.f32 %v7267_v31, %v7251_v6  ;;  %v7269_v34 = vpop.eup %7268  ;;  %v2084_v4 = vld [vmem:[%s7453_s19 + $0x8] sm:$0xff]  ;;  %v6913_v30 = vpack.c.bf16 %v2475_v29, %v2474_v28  ;;  %v2566_v31 = vld [vmem:[%s7478_s20] sm:$0xff]  ;;  %s8257_s19 = sld [smem:[#allocation14_spill]] }
 0x50a   :  { %v1758_v36 = vmul.f32 %v7269_v34, %v7253_v9  ;;  %6378 = vmatprep.subr.mxu1 %v2084_v4  ;;  %v2718_v28 = vld [vmem:[%s8249_s13 + $0x48] sm:$0xff] }
 0x50b   :  { %6363 = vmatprep.mubr.msk.f32.mxu0 %vm1670_vm4, %v1755_v32  ;;  %v2567_v32 = vld [vmem:[%s7478_s20 + $0x8] sm:$0xff]  ;;  %v6949_v29 = vpack.c.bf16 %v2718_v28, %v2717_v26  ;;  %v3043_v26 = vld [vmem:[%s8250_s17 + $0x60] sm:$0xff] }
 0x50c   :  { %v7271_v35 = vpop.eup %7270  ;;  %6364 = vmatmul.mubr.msk.f32.vlgmr.msra.gmra.mrb[18].mxu0 %vm1670_vm4, %v1756_v33  ;;  %v2568_v33 = vld [vmem:[%s7478_s20 + $0x10] sm:$0xff]  ;;  %v6917_v34 = vpack.c.bf16 %v2567_v32, %v2566_v31  ;;  %v2712_v31 = vld [vmem:[%s8249_s13 + $0x18] sm:$0xff] }
 0x50d   :  { %v1757_v2 = vmul.f32 %v7271_v35, %v7255_v11  ;;  %6374 = vmatpush3.msra.mxu0 %v2083_v37  ;;  %v2569_v35 = vld [vmem:[%s7478_s20 + $0x18] sm:$0xff]  ;;  %v2571_v37 = vld [vmem:[%s7478_s20 + $0x28] sm:$0xff]  ;;  %v2719_v32 = vld [vmem:[%s8249_s13 + $0x50] sm:$0xff] }
 0x50e   :  { %6383 = vmatprep.subr.mxu0 %v2085_v38 }
 0x50f   :  { %6370 = vmatprep.mubr.msk.f32.mxu1 %vm1670_vm4, %v1757_v2  ;;  %v6921_v2 = vpack.c.bf16 %v2569_v35, %v2568_v33 }
 0x510   :  { %6371 = vmatmul.mubr.msk.f32.vlgmr.msra.gmra.mrb[22].mxu1 %vm1670_vm4, %v1758_v36  ;;  %v2570_v36 = vld [vmem:[%s7478_s20 + $0x20] sm:$0xff] }
 0x511   :  { %6379 = vmatpush3.msra.mxu1 %v2084_v4  ;;  %v6925_v4 = vpack.c.bf16 %v2571_v37, %v2570_v36  ;;  %v2714_v36 = vld [vmem:[%s8249_s13 + $0x28] sm:$0xff]  ;;  %v3031_v37 = vld [vmem:[%s8250_s17] sm:$0xff] }
 0x512   :  { %6388 = vmatprep.subr.mxu1 %v2086_v39 }
 0x5d7   :  { %v6351_v40 = vpop.f32.mrb[16].mxu0 }
 0x5d8   :  { %v1831_v41 = vpop.f32.mrb[17].mxu0 }
 0x5d9   :  { %6375 = vmatprep.mubr.msk.f32.mxu0 %vm1321_vm2, %v1831_v41 }
 0x5da   :  { %6376 = vmatmul.mubr.msk.f32.vlgmr.msra.gmra.mrb[20].mxu0 %vm1321_vm2, %v6351_v40 }
 0x5db   :  { %v6358_v42 = vpop.f32.mrb[20].mxu1  ;;  %6384 = vmatpush3.msra.mxu0 %v2085_v38 }
 0x5dc   :  { %v1912_v43 = vpop.f32.mrb[21].mxu1  ;;  %6910 = vmatprep.subr.bf16.mxu0 %v6909_v27 }
 0x5dd   :  { %6380 = vmatprep.mubr.msk.f32.mxu1 %vm1321_vm2, %v1912_v43 }
 0x5de   :  { %6381 = vmatmul.mubr.msk.f32.vlgmr.msra.gmra.mrb[24].mxu1 %vm1321_vm2, %v6358_v42 }
 0x5df   :  { %v6365_v44 = vpop.f32.mrb[18].mxu0  ;;  %6389 = vmatpush3.msra.mxu1 %v2086_v39 }
 0x5e0   :  { %v1993_v48 = vpop.f32.mrb[19].mxu0  ;;  %6918 = vmatprep.subr.bf16.mxu1 %v6917_v34 }
 0x5e1   :  { %6385 = vmatprep.mubr.msk.f32.mxu0 %vm1321_vm2, %v1993_v48  ;;  %v5723_v48 = vld [vmem:[%s7458_s24] ss:$0 sm:$0xff]  ;;  %s8258_s24 = sld [smem:[#allocation15_spill]] }
 0x5e2   :  { %6386 = vmatmul.mubr.msk.f32.vlgmr.msra.gmra.mrb[22].mxu0 %vm1321_vm2, %v6365_v44 }
 0x5e3   :  { %v6372_v49 = vpop.f32.mrb[22].mxu1  ;;  %6912 = vmatpush3.bf16.msra.mxu0 %v6909_v27 }
 0x5e4   :  { %v2074_v50 = vpop.f32.mrb[23].mxu1  ;;  %6914 = vmatprep.subr.bf16.mxu0 %v6913_v30 }
 0x5e5   :  { %6390 = vmatprep.mubr.msk.f32.mxu1 %vm1321_vm2, %v2074_v50 }
 0x5e6   :  { %6391 = vmatmul.mubr.msk.f32.vlgmr.msra.gmra.mrb[26].mxu1 %vm1321_vm2, %v6372_v49 }
 0x5e7   :  { %6916 = vmatpush3.bf16.msra.mxu0 %v6913_v30  ;;  %6920 = vmatpush3.bf16.msra.mxu1 %v6917_v34  ;;  %v2711_v30 = vld [vmem:[%s8249_s13 + $0x10] sm:$0xff]  ;;  %v2720_v34 = vld [vmem:[%s8249_s13 + $0x58] sm:$0xff] }
 0x5e8   :  { %6922 = vmatprep.subr.bf16.mxu1 %v6921_v2  ;;  %v6937_v33 = vpack.c.bf16 %v2712_v31, %v2711_v30  ;;  %v6953_v35 = vpack.c.bf16 %v2720_v34, %v2719_v32  ;;  %v3356_v30 = vld [vmem:[%s8253_s3 + $0x48] sm:$0xff]  ;;  %v3046_v34 = vld [vmem:[%s8250_s17 + $0x78] sm:$0xff] }
 0x5eb   :  { %6924 = vmatpush3.bf16.msra.mxu1 %v6921_v2  ;;  %v2713_v2 = vld [vmem:[%s8249_s13 + $0x20] sm:$0xff] }
 0x5ec   :  { %6926 = vmatprep.subr.bf16.mxu1 %v6925_v4 }
 0x5ef   :  { %6928 = vmatpush3.bf16.msra.mxu1 %v6925_v4  ;;  %v6941_v4 = vpack.c.bf16 %v2714_v36, %v2713_v2  ;;  %v3358_v2 = vld [vmem:[%s8253_s3 + $0x58] sm:$0xff] }
 0x6ad   :  { %v6377_v51 = vpop.f32.mrb[20].mxu0 }
 0x6ae   :  { %v2159_v52 = vpop.f32.mrb[21].mxu0  ;;  %v2418_v54 = vsel %vm279_vm1, %v6377_v51, 0.0 }
 0x6af   :  { %v2411_v57 = vsel %vm279_vm1, %v2159_v52, 0.0  ;;  %v5724_v52 = vld [vmem:[%s8246_s0] ss:$0 sm:$0xff]  ;;  %s7394_s0 = smov [#allocation2]  }
 0x6b1   :  { %v6382_v53 = vpop.f32.mrb[24].mxu1 }
 0x6b2   :  { %v2419_v55 = vsel %vm279_vm1, %v6382_v53, 0.0  ;;  %v2240_v56 = vpop.f32.mrb[25].mxu1 }
 0x6b3   :  { %v2420_v58 = vadd.f32 %v2419_v55, %v2418_v54  ;;  %v2412_v59 = vsel %vm279_vm1, %v2240_v56, 0.0 }
 0x6b4   :  { %v2413_v60 = vadd.f32 %v2412_v59, %v2411_v57  ;;  %v2572_v57 = vld [vmem:[%s7478_s20 + $0x30] sm:$0xff] }
 0x6b5   :  { %v6387_v61 = vpop.f32.mrb[22].mxu0 }
 0x6b6   :  { %v2421_v62 = vsel %vm279_vm1, %v6387_v61, 0.0  ;;  %v2321_v63 = vpop.f32.mrb[23].mxu0 }
 0x6b7   :  { %v2422_v0 = vadd.f32 %v2421_v62, %v2420_v58  ;;  %v2414_v1 = vsel %vm279_vm1, %v2321_v63, 0.0  ;;  %v2573_v58 = vld [vmem:[%s7478_s20 + $0x38] sm:$0xff]  ;;  %s8260_s20 = sld [smem:[#allocation19_spill]] }
 0x6b8   :  { %v2415_v3 = vadd.f32 %v2414_v1, %v2413_v60  ;;  %v6929_v59 = vpack.c.bf16 %v2573_v58, %v2572_v57  ;;  %v5725_v60 = vld [vmem:[%s8247_s5] ss:$0 sm:$0xff]  ;;  %v2715_v57 = vld [vmem:[%s8249_s13 + $0x30] sm:$0xff]  ;;  %v2716_v58 = vld [vmem:[%s8249_s13 + $0x38] sm:$0xff]  ;;  %s5609_s5 = sshll.u32 %s7394_s0, 4  ;;  %s5610_s5 = int_to_ptr.vmem [resolvable:$true] %s5609_s5 }
 0x6b9   :  { %v6392_v6 = vpop.f32.mrb[26].mxu1  ;;  %p7327_p1 = scmp.lt.s32.totalorder %s5610_s5, %s5610_s5 }
 0x6ba   :  { %v2423_v8 = vsel %vm279_vm1, %v6392_v6, 0.0  ;;  %v2402_v9 = vpop.f32.mrb[27].mxu1  ;;  %6930 = vmatprep.subr.bf16.mxu1 %v6929_v59  ;;  %v5728_v6 = vld [vmem:[%s8248_s9] ss:$0 sm:$0xff]  ;;  %s7322_s9 = scalar_lea.vmem %s5610_s5, 32 }
 0x6bb   :  { %v2424_v10 = vadd.f32 %v2423_v8, %v2422_v0  ;;  %v2416_v11 = vsel %vm279_vm1, %v2402_v9, 0.0  ;;  %6932 = vmatpush3.bf16.msra.mxu1 %v6929_v59  ;;  %v3033_v59 = vld [vmem:[%s8250_s17 + $0x10] sm:$0xff]  ;;  %p7323_p0 = scmp.ne.s32.totalorder %s5610_s5, %s7322_s9  ;;  %p7328_p2 = scmp.lt.s32.totalorder %s7322_s9, %s7322_s9 }
 0x6bc   :  { %v2417_v12 = vadd.f32 %v2416_v11, %v2415_v3  ;;  %6950 = vmatprep.subr.bf16.mxu1 %v6949_v29 }
 0x6bd   :  { %v2426_v13 = vadd.f32 %v2424_v10, %v7648_v47  ;;  %p7329_p3 = por %p7328_p2, %p7327_p1 }
 0x6be   :  { %v2425_v14 = vadd.f32 %v2417_v12, %v7646_v46 }
 0x6bf   :  { %v2432_v15 = vsel %vm279_vm1, %v2426_v13, 0.0  ;;  %p7330_p4 = pnand %p7329_p3, %p7323_p0 }
 0x6c0   :  { %2433 = vadd.xlane.f32.xlu1 %v2432_v15  ;;  %v2429_v16 = vsel %vm279_vm1, %v2425_v14, 0.0 }
 0x6c1   :  { %2430 = vadd.xlane.f32.xlu0 %v2429_v16 }
 0x74d   :  { %v2434_v17 = vpop.xlane.xlu1 %2433 }
 0x74e   :  { %v2437_v18 = vmul.f32 0.03125, %v2434_v17  ;;  %v2431_v19 = vpop.xlane.xlu0 %2430 }
 0x74f   :  { %v2436_v20 = vmul.f32 0.03125, %v2431_v19 }
 0x750   :  { %v2439_v21 = vsub.f32 %v2426_v13, %v2437_v18 }
 0x751   :  { %v2438_v22 = vsub.f32 %v2425_v14, %v2436_v20 }
 0x752   :  { %v2441_v23 = vmul.f32 %v2439_v21, %v2439_v21 }
 0x753   :  { %v2440_v47 = vmul.f32 %v2438_v22, %v2438_v22 }
 0x754   :  { %v2445_v46 = vsel %vm279_vm1, %v2441_v23, 0.0 }
 0x755   :  { %2446 = vadd.xlane.f32.xlu1 %v2445_v46  ;;  %v2442_v24 = vsel %vm279_vm1, %v2440_v47, 0.0 }
 0x756   :  { %2443 = vadd.xlane.f32.xlu0 %v2442_v24  ;;  %v2709_v24 = vld [vmem:[%s8249_s13] sm:$0xff] }
 0x757   :  { %v6933_v27 = vpack.c.bf16 %v2710_v25, %v2709_v24  ;;  %v3350_v24 = vld [vmem:[%s8253_s3 + $0x18] sm:$0xff] }
 0x759   :  { %6934 = vmatprep.subr.bf16.mxu0 %v6933_v27 }
 0x7e2   :  { %v2447_v38 = vpop.xlane.xlu1 %2446 }
 0x7e3   :  { %v2449_v39 = vmul.f32 0.03125, %v2447_v38  ;;  %v2444_v40 = vpop.xlane.xlu0 %2443  ;;  %v3032_v38 = vld [vmem:[%s8250_s17 + $0x8] sm:$0xff] }
 0x7e4   :  { %v2448_v41 = vmul.f32 0.03125, %v2444_v40 }
 0x7e5   :  { %v2451_v42 = vadd.f32 1e-06, %v2449_v39  ;;  %v6965_v39 = vpack.c.bf16 %v3032_v38, %v3031_v37  ;;  %v3351_v37 = vld [vmem:[%s8253_s3 + $0x20] sm:$0xff] }
 0x7e6   :  { %v2450_v43 = vadd.f32 1e-06, %v2448_v41 }
 0x7e7   :  { %7272 = vrsqrt.f32 %v2451_v42 }
 0x7e8   :  { %7274 = vrsqrt.f32 %v2450_v43 }
 0x7f1   :  { %v7273_v44 = vpop.eup %7272 }
 0x7f2   :  { %v7275_v49 = vpop.eup %7274  ;;  %v2455_v50 = vmul.f32 %v7273_v44, %v2439_v21 }
 0x7f3   :  { %v2454_v51 = vmul.f32 %v7275_v49, %v2438_v22 }
 0x7f4   :  { %v2463_v53 = vmul.f32 %v5723_v48, %v2455_v50  ;;  %v5731_v50 = vld [vmem:[%s8251_s21] ss:$0 sm:$0xff] }
 0x7f5   :  { %v2462_v54 = vmul.f32 %v5723_v48, %v2454_v51 }
 0x7f6   :  { %v2471_v56 = vadd.f32 %v5724_v52, %v2463_v53 }
 0x7f7   :  { %v2470_v55 = vadd.f32 %v5724_v52, %v2462_v54  ;;  %v5732_v54 = vld [vmem:[%s8252_s25] ss:$0 sm:$0xff] }
 0x7f9   :  { %6401 = vmatprep.mubr.msk.f32.mxu0 %vm279_vm1, %v2470_v55 }
 0x7fa   :  { %6402 = vmatmul.mubr.msk.f32.vlgmr.msra.gmra.mrb[24].mxu0 %vm279_vm1, %v2471_v56 }
 0x7fb   :  { %6936 = vmatpush3.bf16.msra.mxu0 %v6933_v27  ;;  %v3044_v27 = vld [vmem:[%s8250_s17 + $0x68] sm:$0xff] }
 0x7fc   :  { %6938 = vmatprep.subr.bf16.mxu0 %v6937_v33  ;;  %v6989_v31 = vpack.c.bf16 %v3044_v27, %v3043_v26 }
 0x7ff   :  { %6940 = vmatpush3.bf16.msra.mxu0 %v6937_v33  ;;  %v3045_v33 = vld [vmem:[%s8250_s17 + $0x70] sm:$0xff] }
 0x800   :  { %6942 = vmatprep.subr.bf16.mxu0 %v6941_v4  ;;  %v6993_v36 = vpack.c.bf16 %v3046_v34, %v3045_v33 }
 0x8cd   :  { %v6403_v61 = vpop.f32.mrb[24].mxu0 }
 0x8ce   :  { %v2561_v62 = vadd.f32 %v6403_v61, %v5725_v60  ;;  %v2555_v63 = vpop.f32.mrb[25].mxu0 }
 0x8cf   :  { %v2556_v0 = vadd.f32 %v5725_v60, %v2555_v63  ;;  %v3034_v60 = vld [vmem:[%s8250_s17 + $0x18] sm:$0xff]  ;;  %v2721_v63 = vld [vmem:[%s8249_s13 + $0x60] sm:$0xff] }
 0x8d0   :  { %v2565_v3 = vmax.f32 %v2561_v62, 0.0 }
 0x8d1   :  { %v2564_v1 = vmax.f32 %v2556_v0, 0.0  ;;  %v6945_v0 = vpack.c.bf16 %v2716_v58, %v2715_v57 }
 0x8d3   :  { %6420 = vmatprep.mubr.msk.f32.mxu1 %vm2581_vm5, %v2564_v1  ;;  %v6969_v1 = vpack.c.bf16 %v3034_v60, %v3033_v59 }
 0x8d4   :  { %6421 = vmatmul.mubr.msk.f32.vlgmr.msra.gmra.mrb[28].mxu1 %vm2581_vm5, %v2565_v3  ;;  %v2722_v3 = vld [vmem:[%s8249_s13 + $0x68] sm:$0xff] }
 0x8d5   :  { %6952 = vmatpush3.bf16.msra.mxu1 %v6949_v29  ;;  %v3355_v29 = vld [vmem:[%s8253_s3 + $0x40] sm:$0xff] }
 0x8d6   :  { %6954 = vmatprep.subr.bf16.mxu1 %v6953_v35  ;;  %v7013_v32 = vpack.c.bf16 %v3356_v30, %v3355_v29 }
 0x8d9   :  { %6956 = vmatpush3.bf16.msra.mxu1 %v6953_v35  ;;  %v3357_v35 = vld [vmem:[%s8253_s3 + $0x50] sm:$0xff] }
 0x8da   :  { %6966 = vmatprep.subr.bf16.mxu1 %v6965_v39  ;;  %v7017_v38 = vpack.c.bf16 %v3358_v2, %v3357_v35  ;;  %v7320_v2 = vld [vmem:[%s7433_s29 + $0x8] sm:$0xff] }
 0x9a7   :  { %v6422_v8 = vpop.f32.mrb[28].mxu1 }
 0x9a8   :  { %v2660_v9 = vadd.f32 %v6422_v8, %v5728_v6  ;;  %v2654_v10 = vpop.f32.mrb[29].mxu1  ;;  %v3040_v8 = vld [vmem:[%s8250_s17 + $0x48] sm:$0xff] }
 0x9a9   :  { %v2655_v11 = vadd.f32 %v5728_v6, %v2654_v10  ;;  %v3039_v6 = vld [vmem:[%s8250_s17 + $0x40] sm:$0xff] }
 0x9aa   :  { %v2664_v12 = vadd.f32 %v2660_v9, %v2471_v56  ;;  %v6957_v9 = vpack.c.bf16 %v2722_v3, %v2721_v63  ;;  %v6981_v10 = vpack.c.bf16 %v3040_v8, %v3039_v6 }
 0x9ab   :  { %v2663_v13 = vadd.f32 %v2655_v11, %v2470_v55  ;;  %v2723_v11 = vld [vmem:[%s8249_s13 + $0x70] sm:$0xff] }
 0x9ac   :  { %v2670_v14 = vsel %vm279_vm1, %v2664_v12, 0.0 }
 0x9ad   :  { %2671 = vadd.xlane.f32.xlu1 %v2670_v14  ;;  %v2667_v15 = vsel %vm279_vm1, %v2663_v13, 0.0  ;;  %v3042_v14 = vld [vmem:[%s8250_s17 + $0x58] sm:$0xff] }
 0x9ae   :  { %2668 = vadd.xlane.f32.xlu0 %v2667_v15 }
 0xa3a   :  { %v2672_v16 = vpop.xlane.xlu1 %2671 }
 0xa3b   :  { %v2674_v17 = vmul.f32 0.03125, %v2672_v16  ;;  %v2669_v18 = vpop.xlane.xlu0 %2668 }
 0xa3c   :  { %v2673_v19 = vmul.f32 0.03125, %v2669_v18  ;;  %v3036_v18 = vld [vmem:[%s8250_s17 + $0x28] sm:$0xff] }
 0xa3d   :  { %v2676_v20 = vsub.f32 %v2664_v12, %v2674_v17  ;;  %v2724_v12 = vld [vmem:[%s8249_s13 + $0x78] sm:$0xff]  ;;  %v3035_v17 = vld [vmem:[%s8250_s17 + $0x20] sm:$0xff] }
 0xa3e   :  { %v2675_v21 = vsub.f32 %v2663_v13, %v2673_v19  ;;  %v3041_v13 = vld [vmem:[%s8250_s17 + $0x50] sm:$0xff]  ;;  %v6961_v15 = vpack.c.bf16 %v2724_v12, %v2723_v11  ;;  %v3347_v19 = vld [vmem:[%s8253_s3] sm:$0xff] }
 0xa3f   :  { %v2678_v22 = vmul.f32 %v2676_v20, %v2676_v20  ;;  %v6985_v16 = vpack.c.bf16 %v3042_v14, %v3041_v13 }
 0xa40   :  { %v2677_v23 = vmul.f32 %v2675_v21, %v2675_v21 }
 0xa41   :  { %v2682_v47 = vsel %vm279_vm1, %v2678_v22, 0.0 }
 0xa42   :  { %2683 = vadd.xlane.f32.xlu1 %v2682_v47  ;;  %v2679_v46 = vsel %vm279_vm1, %v2677_v23, 0.0  ;;  %v3037_v23 = vld [vmem:[%s8250_s17 + $0x30] sm:$0xff]  ;;  %v3038_v47 = vld [vmem:[%s8250_s17 + $0x38] sm:$0xff] }
 0xa43   :  { %2680 = vadd.xlane.f32.xlu0 %v2679_v46  ;;  %v3349_v46 = vld [vmem:[%s8253_s3 + $0x10] sm:$0xff]  ;;  %v6977_v25 = vpack.c.bf16 %v3038_v47, %v3037_v23 }
 0xa44   :  { %v7001_v28 = vpack.c.bf16 %v3350_v24, %v3349_v46 }
 0xacf   :  { %v2684_v40 = vpop.xlane.xlu1 %2683 }
 0xad0   :  { %v2686_v41 = vmul.f32 0.03125, %v2684_v40  ;;  %v2681_v42 = vpop.xlane.xlu0 %2680  ;;  %v3353_v40 = vld [vmem:[%s8253_s3 + $0x30] sm:$0xff] }
 0xad1   :  { %v2685_v43 = vmul.f32 0.03125, %v2681_v42 }
 0xad2   :  { %v2688_v44 = vadd.f32 1e-06, %v2686_v41  ;;  %v3354_v41 = vld [vmem:[%s8253_s3 + $0x38] sm:$0xff] }
 0xad3   :  { %v2687_v48 = vadd.f32 1e-06, %v2685_v43  ;;  %v7009_v42 = vpack.c.bf16 %v3354_v41, %v3353_v40  ;;  %v3359_v43 = vld [vmem:[%s8253_s3 + $0x60] sm:$0xff] }
 0xad4   :  { %7276 = vrsqrt.f32 %v2688_v44  ;;  %v3360_v44 = vld [vmem:[%s8253_s3 + $0x68] sm:$0xff] }
 0xad5   :  { %7278 = vrsqrt.f32 %v2687_v48  ;;  %v7021_v48 = vpack.c.bf16 %v3360_v44, %v3359_v43 }
 0xade   :  { %v7277_v49 = vpop.eup %7276 }
 0xadf   :  { %v7279_v51 = vpop.eup %7278  ;;  %v2692_v52 = vmul.f32 %v7277_v49, %v2676_v20  ;;  %v3348_v20 = vld [vmem:[%s8253_s3 + $0x8] sm:$0xff]  ;;  %v3361_v49 = vld [vmem:[%s8253_s3 + $0x70] sm:$0xff] }
 0xae0   :  { %v2691_v53 = vmul.f32 %v7279_v51, %v2675_v21  ;;  %v6973_v21 = vpack.c.bf16 %v3036_v18, %v3035_v17  ;;  %v6997_v22 = vpack.c.bf16 %v3348_v20, %v3347_v19 }
 0xae1   :  { %v2700_v55 = vmul.f32 %v5731_v50, %v2692_v52 }
 0xae2   :  { %v2699_v56 = vmul.f32 %v5731_v50, %v2691_v53  ;;  %v3362_v50 = vld [vmem:[%s8253_s3 + $0x78] sm:$0xff] }
 0xae3   :  { %v7876_v62 = vadd.f32 %v5732_v54, %v2700_v55  ;;  %v7025_v51 = vpack.c.bf16 %v3362_v50, %v3361_v49 }
 0xae4   :  { %v7874_v61 = vadd.f32 %v5732_v54, %v2699_v56 }
 0xae6   :  { %6431 = vmatprep.mubr.msk.f32.mxu0 %vm279_vm1, %v7874_v61  ;;  %6453 = vmatprep.mubr.msk.f32.mxu1 %vm279_vm1, %v7874_v61 }
 0xae7   :  { %6432 = vmatmul.mubr.msk.f32.vlgmr.msra.gmra.mrb[26].mxu0 %vm279_vm1, %v7876_v62  ;;  %6454 = vmatmul.mubr.msk.f32.vlgmr.msra.gmra.mrb[30].mxu1 %vm279_vm1, %v7876_v62 }
 0xae8   :  { %6944 = vmatpush3.bf16.msra.mxu0 %v6941_v4  ;;  %6968 = vmatpush3.bf16.msra.mxu1 %v6965_v39  ;;  %v3352_v4 = vld [vmem:[%s8253_s3 + $0x28] sm:$0xff] }
 0xae9   :  { %6442 = vmatprep.mubr.msk.f32.mxu0 %vm279_vm1, %v7874_v61  ;;  %6475 = vmatprep.mubr.msk.f32.mxu1 %vm279_vm1, %v7874_v61  ;;  %v7005_v39 = vpack.c.bf16 %v3352_v4, %v3351_v37  ;;  %v7321_v4 = vld [vmem:[%s7433_s29] sm:$0xff]  ;;  %s8254_s29 = sld [smem:[#allocation13_spill]] }
 0xaea   :  { %6946 = vmatprep.subr.bf16.mxu0 %v6945_v0  ;;  %6970 = vmatprep.subr.bf16.mxu1 %v6969_v1 }
 0xaec   :  { %6948 = vmatpush3.bf16.msra.mxu0 %v6945_v0  ;;  %6972 = vmatpush3.bf16.msra.mxu1 %v6969_v1 }
 0xaed   :  { %6958 = vmatprep.subr.bf16.mxu0 %v6957_v9  ;;  %6982 = vmatprep.subr.bf16.mxu1 %v6981_v10 }
 0xaef   :  { %6443 = vmatmul.mubr.msk.f32.vlgmr.msra.gmra.mrb[28].mxu0 %vm279_vm1, %v7876_v62  ;;  %6476 = vmatmul.mubr.msk.f32.vlgmr.msra.gmra.mrb[32].mxu1 %vm279_vm1, %v7876_v62 }
 0xaf0   :  { %6960 = vmatpush3.bf16.msra.mxu0 %v6957_v9  ;;  %6464 = vmatprep.mubr.msk.f32.mxu0 %vm279_vm1, %v7874_v61 }
 0xaf1   :  { %6984 = vmatpush3.bf16.msra.mxu1 %v6981_v10  ;;  %6497 = vmatprep.mubr.msk.f32.mxu1 %vm279_vm1, %v7874_v61 }
 0xaf2   :  { %6962 = vmatprep.subr.bf16.mxu0 %v6961_v15  ;;  %6986 = vmatprep.subr.bf16.mxu1 %v6985_v16 }
 0xaf4   :  { %6964 = vmatpush3.bf16.msra.mxu0 %v6961_v15 }
 0xaf5   :  { %6988 = vmatpush3.bf16.msra.mxu1 %v6985_v16  ;;  %6974 = vmatprep.subr.bf16.mxu0 %v6973_v21 }
 0xaf6   :  { %6998 = vmatprep.subr.bf16.mxu1 %v6997_v22 }
 0xaf7   :  { %6465 = vmatmul.mubr.msk.f32.vlgmr.msra.gmra.mrb[30].mxu0 %vm279_vm1, %v7876_v62 }
 0xaf8   :  { %6498 = vmatmul.mubr.msk.f32.vlgmr.msra.gmra.mrb[34].mxu1 %vm279_vm1, %v7876_v62  ;;  %6976 = vmatpush3.bf16.msra.mxu0 %v6973_v21 }
 0xaf9   :  { %6486 = vmatprep.mubr.msk.f32.mxu0 %vm279_vm1, %v7874_v61  ;;  %7000 = vmatpush3.bf16.msra.mxu1 %v6997_v22 }
 0xafa   :  { %6519 = vmatprep.mubr.msk.f32.mxu1 %vm279_vm1, %v7874_v61  ;;  %6978 = vmatprep.subr.bf16.mxu0 %v6977_v25 }
 0xafb   :  { %7002 = vmatprep.subr.bf16.mxu1 %v7001_v28 }
 0xafc   :  { %6980 = vmatpush3.bf16.msra.mxu0 %v6977_v25 }
 0xafd   :  { %7004 = vmatpush3.bf16.msra.mxu1 %v7001_v28  ;;  %6990 = vmatprep.subr.bf16.mxu0 %v6989_v31 }
 0xafe   :  { %7014 = vmatprep.subr.bf16.mxu1 %v7013_v32 }
 0xaff   :  { %6487 = vmatmul.mubr.msk.f32.vlgmr.msra.gmra.mrb[32].mxu0 %vm279_vm1, %v7876_v62 }
 0xb00   :  { %6520 = vmatmul.mubr.msk.f32.vlgmr.msra.gmra.mrb[36].mxu1 %vm279_vm1, %v7876_v62  ;;  %6992 = vmatpush3.bf16.msra.mxu0 %v6989_v31 }
 0xb01   :  { %6508 = vmatprep.mubr.msk.f32.mxu0 %vm279_vm1, %v7874_v61  ;;  %7016 = vmatpush3.bf16.msra.mxu1 %v7013_v32 }
 0xb02   :  { %6541 = vmatprep.mubr.msk.f32.mxu1 %vm279_vm1, %v7874_v61  ;;  %6994 = vmatprep.subr.bf16.mxu0 %v6993_v36 }
 0xb03   :  { %7018 = vmatprep.subr.bf16.mxu1 %v7017_v38 }
 0xb04   :  { %6996 = vmatpush3.bf16.msra.mxu0 %v6993_v36 }
 0xb05   :  { %7020 = vmatpush3.bf16.msra.mxu1 %v7017_v38  ;;  %7006 = vmatprep.subr.bf16.mxu0 %v7005_v39 }
 0xb07   :  { %6509 = vmatmul.mubr.msk.f32.vlgmr.msra.gmra.mrb[34].mxu0 %vm279_vm1, %v7876_v62 }
 0xb08   :  { %6542 = vmatmul.mubr.msk.f32.vlgmr.msra.gmra.mrb[38].mxu1 %vm279_vm1, %v7876_v62  ;;  %7008 = vmatpush3.bf16.msra.mxu0 %v7005_v39 }
 0xb09   :  { %6530 = vmatprep.mubr.msk.f32.mxu0 %vm279_vm1, %v7874_v61  ;;  %7010 = vmatprep.subr.bf16.mxu0 %v7009_v42 }
 0xb0c   :  { %7012 = vmatpush3.bf16.msra.mxu0 %v7009_v42 }
 0xb0d   :  { %7022 = vmatprep.subr.bf16.mxu0 %v7021_v48 }
 0xb0f   :  { %6531 = vmatmul.mubr.msk.f32.vlgmr.msra.gmra.mrb[36].mxu0 %vm279_vm1, %v7876_v62 }
 0xb10   :  { %7024 = vmatpush3.bf16.msra.mxu0 %v7021_v48  ;;  %6552 = vmatprep.mubr.msk.f32.mxu0 %vm279_vm1, %v7874_v61 }
 0xb11   :  { %7026 = vmatprep.subr.bf16.mxu0 %v7025_v51 }
 0xb14   :  { %7028 = vmatpush3.bf16.msra.mxu0 %v7025_v51 }
 0xb17   :  { %6553 = vmatmul.mubr.msk.f32.vlgmr.msra.gmra.mrb[38].mxu0 %vm279_vm1, %v7876_v62 }
 0xbba   :  { %v6433_v52 = vpop.f32.mrb[26].mxu0  ;;  %v6455_v53 = vpop.f32.mrb[30].mxu1 }
 0xbbb   :  { %v2797_v54 = vpop.f32.mrb[27].mxu0  ;;  %v2947_v55 = vpop.f32.mrb[31].mxu1 }
 0xbbc   :  { %6559 = vmatprep.mubr.msk.f32.mxu1 %vm1321_vm2, %v2797_v54 }
 0xbc2   :  { %v6444_v56 = vpop.f32.mrb[28].mxu0  ;;  %v6477_v57 = vpop.f32.mrb[32].mxu1 }
 0xbc3   :  { %v2872_v58 = vpop.f32.mrb[29].mxu0  ;;  %v3113_v59 = vpop.f32.mrb[33].mxu1 }
 0xbc4   :  { %v7029_v60 = vpack.c.bf16 %v6477_v57, %v3113_v59  ;;  %6566 = vmatprep.mubr.msk.f32.mxu0 %vm1321_vm2, %v2872_v58 }
 0xbc6   :  { %7031 = vmatprep.subr.msk.bf16.mxu1 %vm7734_vm3, %v7029_v60 }
 0xbc7   :  { %7034 = vmatpush3.bf16.xpose.msk.msra.mxu1 %vm7734_vm3, %v7029_v60 }
 0xbca   :  { %v6466_v63 = vpop.f32.mrb[30].mxu0 }
 0xbcb   :  { %v6499_v0 = vpop.f32.mrb[34].mxu1  ;;  %v3022_v1 = vpop.f32.mrb[31].mxu0 }
 0xbcc   :  { %v3263_v3 = vpop.f32.mrb[35].mxu1 }
 0xbcd   :  { %v7041_v6 = vpack.c.bf16 %v6499_v0, %v3263_v3 }
 0xbce   :  { %6560 = vmatmul.mubr.msk.f32.vlgmr.msra.gmra.mrb[40].mxu1 %vm1321_vm2, %v6433_v52 }
 0xbcf   :  { %7043 = vmatprep.subr.msk.bf16.mxu1 %vm7734_vm3, %v7041_v6  ;;  %6573 = vmatprep.mubr.msk.f32.mxu1 %vm1321_vm2, %v2947_v55 }
 0xbd0   :  { %7046 = vmatpush3.bf16.xpose.msk.msra.mxu1 %vm7734_vm3, %v7041_v6 }
 0xbd2   :  { %v6488_v8 = vpop.f32.mrb[32].mxu0 }
 0xbd3   :  { %v6521_v9 = vpop.f32.mrb[36].mxu1  ;;  %v3188_v10 = vpop.f32.mrb[33].mxu0 }
 0xbd4   :  { %v7035_v11 = vpack.c.bf16 %v6488_v8, %v3188_v10  ;;  %v3429_v12 = vpop.f32.mrb[37].mxu1 }
 0xbd5   :  { %v7053_v13 = vpack.c.bf16 %v6521_v9, %v3429_v12 }
 0xbd6   :  { %7037 = vmatprep.subr.msk.bf16.mxu0 %vm7734_vm3, %v7035_v11 }
 0xbd7   :  { %6574 = vmatmul.mubr.msk.f32.vlgmr.msra.gmra.mrb[42].mxu1 %vm1321_vm2, %v6455_v53  ;;  %7054 = vmatprep.subr.bf16.mxu1 %v7053_v13 }
 0xbd8   :  { %7040 = vmatpush3.bf16.xpose.msk.msra.mxu0 %vm7734_vm3, %v7035_v11  ;;  %7056 = vmatpush3.bf16.msra.mxu1 %v7053_v13 }
 0xbda   :  { %v6510_v14 = vpop.f32.mrb[34].mxu0 }
 0xbdb   :  { %v6543_v15 = vpop.f32.mrb[38].mxu1  ;;  %v3338_v16 = vpop.f32.mrb[35].mxu0 }
 0xbdc   :  { %v7047_v17 = vpack.c.bf16 %v6510_v14, %v3338_v16  ;;  %v3579_v18 = vpop.f32.mrb[39].mxu1 }
 0xbdd   :  { %v7061_v19 = vpack.c.bf16 %v6543_v15, %v3579_v18 }
 0xbde   :  { %7049 = vmatprep.subr.msk.bf16.mxu0 %vm7734_vm3, %v7047_v17 }
 0xbdf   :  { %6567 = vmatmul.mubr.msk.f32.vlgmr.msra.gmra.mrb[40].mxu0 %vm1321_vm2, %v6444_v56 }
 0xbe0   :  { %7052 = vmatpush3.bf16.xpose.msk.msra.mxu0 %vm7734_vm3, %v7047_v17  ;;  %6580 = vmatprep.mubr.msk.f32.mxu0 %vm1321_vm2, %v3022_v1 }
 0xbe1   :  { %7062 = vmatprep.subr.bf16.mxu0 %v7061_v19 }
 0xbe2   :  { %v6532_v20 = vpop.f32.mrb[36].mxu0 }
 0xbe3   :  { %v3504_v21 = vpop.f32.mrb[37].mxu0 }
 0xbe4   :  { %v7981_v22 = vpack.c.bf16 %v6532_v20, %v3504_v21 }
 0xbe6   :  { %7058 = vmatprep.subr.bf16.mxu1 %v7981_v22 }
 0xbe7   :  { %6581 = vmatmul.mubr.msk.f32.vlgmr.msra.gmra.mrb[42].mxu0 %vm1321_vm2, %v6466_v63 }
 0xbe8   :  { %7064 = vmatpush3.bf16.msra.mxu0 %v7061_v19 }
 0xbea   :  { %v6554_v23 = vpop.f32.mrb[38].mxu0 }
 0xbeb   :  { %v3654_v47 = vpop.f32.mrb[39].mxu0 }
 0xbec   :  { %v7985_v46 = vpack.c.bf16 %v6554_v23, %v3654_v47 }
 0xca1   :  { %v6561_v24 = vpop.f32.mrb[40].mxu1 }
 0xca2   :  { %v3747_v45 = vadd.f32 %v6561_v24, %v7767_v5  ;;  %v3741_v25 = vpop.f32.mrb[41].mxu1 }
 0xca3   :  { %v3742_v26 = vadd.f32 %v3741_v25, %v7770_v7 }
 0xca4   :  { %v4014_v27 = vsel %vm1670_vm4, %v3747_v45, -inf }
 0xca5   :  { %4015 = vmax.xlane.f32.xlu1 %v4014_v27  ;;  %v4011_v28 = vsel %vm1670_vm4, %v3742_v26, -inf }
 0xca6   :  { %4012 = vmax.xlane.f32.xlu0 %v4011_v28 }
 0xcaa   :  { %v6575_v29 = vpop.f32.mrb[42].mxu1 }
 0xcab   :  { %v3921_v30 = vadd.f32 %v6575_v29, %v7767_v5  ;;  %v3915_v31 = vpop.f32.mrb[43].mxu1 }
 0xcac   :  { %v3916_v32 = vadd.f32 %v3915_v31, %v7770_v7 }
 0xcad   :  { %v4026_v33 = vsel %vm1670_vm4, %v3921_v30, -inf }
 0xcae   :  { %4027 = vmax.xlane.f32.xlu1 %v4026_v33  ;;  %v4023_v34 = vsel %vm1670_vm4, %v3916_v32, -inf }
 0xcaf   :  { %4024 = vmax.xlane.f32.xlu0 %v4023_v34 }
 0xcb2   :  { %v6568_v35 = vpop.f32.mrb[40].mxu0 }
 0xcb3   :  { %v3834_v36 = vadd.f32 %v7320_v2, %v6568_v35  ;;  %v3828_v37 = vpop.f32.mrb[41].mxu0 }
 0xcb4   :  { %v3829_v38 = vadd.f32 %v7321_v4, %v3828_v37 }
 0xcb5   :  { %v4020_v39 = vsel %vm1670_vm4, %v3834_v36, -inf }
 0xcb6   :  { %4021 = vmax.xlane.f32.xlu1 %v4020_v39  ;;  %v4017_v5 = vsel %vm1670_vm4, %v3829_v38, -inf }
 0xcb7   :  { %4018 = vmax.xlane.f32.xlu0 %v4017_v5 }
 0xcba   :  { %v6582_v40 = vpop.f32.mrb[42].mxu0 }
 0xcbb   :  { %v4008_v7 = vadd.f32 %v7320_v2, %v6582_v40  ;;  %v4002_v41 = vpop.f32.mrb[43].mxu0 }
 0xcbc   :  { %v4003_v42 = vadd.f32 %v7321_v4, %v4002_v41 }
 0xcbd   :  { %v4032_v43 = vsel %vm1670_vm4, %v4008_v7, -inf }
 0xcbe   :  { %4033 = vmax.xlane.f32.xlu1 %v4032_v43  ;;  %v4029_v44 = vsel %vm1670_vm4, %v4003_v42, -inf }
 0xcbf   :  { %4030 = vmax.xlane.f32.xlu0 %v4029_v44 }
 0xd32   :  { %v4016_v48 = vpop.xlane.xlu1 %4015 }
 0xd33   :  { %v4036_v49 = vsub.f32 %v3747_v45, %v4016_v48  ;;  %v4013_v50 = vpop.xlane.xlu0 %4012 }
 0xd34   :  { %v4035_v51 = vsub.f32 %v3742_v26, %v4013_v50 }
 0xd35   :  { %v4045_v52 = vmul.f32 1.442695, %v4036_v49 }
 0xd36   :  { %v4043_v53 = vmul.f32 1.442695, %v4035_v51  ;;  %v4423_v51 = vld [vmem:[%s8254_s29] sm:$0xff] }
 0xd37   :  { %7280 = vpow2.f32 %v4045_v52  ;;  %6611 = vmatprep.subr.mxu0 %v4423_v51  ;;  %v4425_v52 = vld [vmem:[%s8254_s29 + $0x10] sm:$0xff] }
 0xd38   :  { %7282 = vpow2.f32 %v4043_v53  ;;  %v4424_v53 = vld [vmem:[%s8254_s29 + $0x8] sm:$0xff] }
 0xd3b   :  { %v4028_v54 = vpop.xlane.xlu1 %4027 }
 0xd3c   :  { %v4040_v55 = vsub.f32 %v3921_v30, %v4028_v54  ;;  %v4025_v56 = vpop.xlane.xlu0 %4024  ;;  %v4426_v54 = vld [vmem:[%s8254_s29 + $0x18] sm:$0xff] }
 0xd3d   :  { %v4039_v57 = vsub.f32 %v3916_v32, %v4025_v56 }
 0xd3e   :  { %v4053_v58 = vmul.f32 1.442695, %v4040_v55 }
 0xd3f   :  { %v4051_v59 = vmul.f32 1.442695, %v4039_v57 }
 0xd40   :  { %7284 = vpow2.f32 %v4053_v58 }
 0xd41   :  { %v7281_v60 = vpop.eup %7280  ;;  %7286 = vpow2.f32 %v4051_v59 }
 0xd42   :  { %v7283_v63 = vpop.eup %7282  ;;  %v4062_v0 = vsel %vm1670_vm4, %v7281_v60, 0.0 }
 0xd43   :  { %v4022_v1 = vpop.xlane.xlu1 %4021  ;;  %4063 = vadd.xlane.f32.xlu1 %v4062_v0  ;;  %v4059_v3 = vsel %vm1670_vm4, %v7283_v63, 0.0 }
 0xd44   :  { %v4038_v6 = vsub.f32 %v3834_v36, %v4022_v1  ;;  %v4019_v8 = vpop.xlane.xlu0 %4018  ;;  %4060 = vadd.xlane.f32.xlu0 %v4059_v3 }
 0xd45   :  { %v4037_v9 = vsub.f32 %v3829_v38, %v4019_v8 }
 0xd46   :  { %v4049_v10 = vmul.f32 1.442695, %v4038_v6 }
 0xd47   :  { %v4047_v11 = vmul.f32 1.442695, %v4037_v9 }
 0xd48   :  { %7288 = vpow2.f32 %v4049_v10 }
 0xd49   :  { %7290 = vpow2.f32 %v4047_v11 }
 0xd4a   :  { %v7285_v12 = vpop.eup %7284 }
 0xd4b   :  { %v7287_v13 = vpop.eup %7286  ;;  %v4034_v14 = vpop.xlane.xlu1 %4033  ;;  %v4074_v15 = vsel %vm1670_vm4, %v7285_v12, 0.0 }
 0xd4c   :  { %v4042_v16 = vsub.f32 %v4008_v7, %v4034_v14  ;;  %4075 = vadd.xlane.f32.xlu1 %v4074_v15  ;;  %v4031_v17 = vpop.xlane.xlu0 %4030  ;;  %v4071_v18 = vsel %vm1670_vm4, %v7287_v13, 0.0 }
 0xd4d   :  { %v4041_v19 = vsub.f32 %v4003_v42, %v4031_v17  ;;  %4072 = vadd.xlane.f32.xlu0 %v4071_v18 }
 0xd4e   :  { %v4057_v20 = vmul.f32 1.442695, %v4042_v16 }
 0xd4f   :  { %v4055_v21 = vmul.f32 1.442695, %v4041_v19 }
 0xd50   :  { %7292 = vpow2.f32 %v4057_v20 }
 0xd51   :  { %7294 = vpow2.f32 %v4055_v21 }
 0xd52   :  { %v7289_v23 = vpop.eup %7288 }
 0xd53   :  { %v7291_v47 = vpop.eup %7290  ;;  %v4068_v24 = vsel %vm1670_vm4, %v7289_v23, 0.0 }
 0xd54   :  { %4069 = vadd.xlane.f32.xlu1 %v4068_v24  ;;  %v4065_v45 = vsel %vm1670_vm4, %v7291_v47, 0.0 }
 0xd55   :  { %4066 = vadd.xlane.f32.xlu0 %v4065_v45 }
 0xd5a   :  { %v7293_v25 = vpop.eup %7292 }
 0xd5b   :  { %v7295_v26 = vpop.eup %7294  ;;  %v4080_v27 = vsel %vm1670_vm4, %v7293_v25, 0.0 }
 0xd5c   :  { %4081 = vadd.xlane.f32.xlu1 %v4080_v27  ;;  %v4077_v28 = vsel %vm1670_vm4, %v7295_v26, 0.0 }
 0xd5d   :  { %4078 = vadd.xlane.f32.xlu0 %v4077_v28 }
 0xdd0   :  { %v4064_v29 = vpop.xlane.xlu1 %4063 }
 0xdd1   :  { %7296 = vrcp.f32 %v4064_v29  ;;  %v4061_v30 = vpop.xlane.xlu0 %4060 }
 0xdd2   :  { %7298 = vrcp.f32 %v4061_v30 }
 0xdd9   :  { %v4076_v31 = vpop.xlane.xlu1 %4075 }
 0xdda   :  { %7300 = vrcp.f32 %v4076_v31  ;;  %v4073_v32 = vpop.xlane.xlu0 %4072 }
 0xddb   :  { %v7297_v33 = vpop.eup %7296  ;;  %7302 = vrcp.f32 %v4073_v32 }
 0xddc   :  { %v7299_v34 = vpop.eup %7298  ;;  %v4092_v2 = vmul.f32 %v7297_v33, %v7281_v60 }
 0xddd   :  { %v4091_v35 = vmul.f32 %v7299_v34, %v7283_v63 }
 0xddf   :  { %6587 = vmatprep.mubr.msk.f32.mxu1 %vm1670_vm4, %v4091_v35 }
 0xde0   :  { %6588 = vmatmul.mubr.msk.f32.vlgmr.msra.gmra.mrb[44].mxu1 %vm1670_vm4, %v4092_v2 }
 0xde1   :  { %v4070_v36 = vpop.xlane.xlu1 %4069  ;;  %7060 = vmatpush3.bf16.msra.mxu1 %v7981_v22 }
 0xde2   :  { %7304 = vrcp.f32 %v4070_v36  ;;  %7066 = vmatprep.subr.bf16.mxu1 %v7985_v46  ;;  %v4067_v37 = vpop.xlane.xlu0 %4066  ;;  %v4811_v36 = vld [vmem:[%s8255_s8] sm:$0xff] }
 0xde3   :  { %7306 = vrcp.f32 %v4067_v37  ;;  %v4812_v37 = vld [vmem:[%s8255_s8 + $0x8] sm:$0xff] }
 0xde4   :  { %v7301_v4 = vpop.eup %7300 }
 0xde5   :  { %v7303_v38 = vpop.eup %7302  ;;  %v4096_v5 = vmul.f32 %v7301_v4, %v7285_v12  ;;  %v7069_v4 = vpack.c.bf16 %v4812_v37, %v4811_v36  ;;  %v5130_v36 = vld [vmem:[%s8261_s15 + $0x8] sm:$0xff]  ;;  %v5147_v37 = vld [vmem:[%s8261_s15 + $0x90] sm:$0xff] }
 0xde6   :  { %v4095_v39 = vmul.f32 %v7303_v38, %v7287_v13  ;;  %v4813_v38 = vld [vmem:[%s8255_s8 + $0x10] sm:$0xff] }
 0xde8   :  { %6601 = vmatprep.mubr.msk.f32.mxu0 %vm1670_vm4, %v4095_v39  ;;  %v4814_v39 = vld [vmem:[%s8255_s8 + $0x18] sm:$0xff] }
 0xde9   :  { %v4082_v40 = vpop.xlane.xlu1 %4081  ;;  %6602 = vmatmul.mubr.msk.f32.vlgmr.msra.gmra.mrb[44].mxu0 %vm1670_vm4, %v4096_v5  ;;  %v7073_v5 = vpack.c.bf16 %v4814_v39, %v4813_v38 }
 0xdea   :  { %7308 = vrcp.f32 %v4082_v40  ;;  %v4079_v7 = vpop.xlane.xlu0 %4078  ;;  %6612 = vmatpush3.msra.mxu0 %v4423_v51  ;;  %v4905_v40 = vld [vmem:[%s8256_s14] sm:$0xff] }
 0xdeb   :  { %7310 = vrcp.f32 %v4079_v7  ;;  %6621 = vmatprep.subr.mxu0 %v4425_v52  ;;  %v4906_v7 = vld [vmem:[%s8256_s14 + $0x8] sm:$0xff] }
 0xdec   :  { %v7305_v41 = vpop.eup %7304 }
 0xded   :  { %v7307_v22 = vpop.eup %7306  ;;  %v4094_v43 = vmul.f32 %v7305_v41, %v7289_v23  ;;  %v4907_v41 = vld [vmem:[%s8256_s14 + $0x10] sm:$0xff] }
 0xdee   :  { %v4093_v42 = vmul.f32 %v7307_v22, %v7291_v47  ;;  %v7077_v22 = vpack.c.bf16 %v4906_v7, %v4905_v40  ;;  %v5132_v40 = vld [vmem:[%s8261_s15 + $0x18] sm:$0xff]  ;;  %v5149_v7 = vld [vmem:[%s8261_s15 + $0xa0] sm:$0xff] }
 0xdf0   :  { %6594 = vmatprep.mubr.msk.f32.mxu1 %vm1670_vm4, %v4093_v42  ;;  %v4908_v42 = vld [vmem:[%s8256_s14 + $0x18] sm:$0xff] }
 0xdf1   :  { %6595 = vmatmul.mubr.msk.f32.vlgmr.msra.gmra.mrb[46].mxu1 %vm1670_vm4, %v4094_v43  ;;  %v7081_v43 = vpack.c.bf16 %v4908_v42, %v4907_v41  ;;  %v5150_v41 = vld [vmem:[%s8261_s15 + $0xa8] sm:$0xff] }
 0xdf2   :  { %7068 = vmatpush3.bf16.msra.mxu1 %v7985_v46  ;;  %v7101_v42 = vpack.c.bf16 %v5150_v41, %v5149_v7 }
 0xdf3   :  { %6616 = vmatprep.subr.mxu1 %v4424_v53 }
 0xdf4   :  { %v7309_v44 = vpop.eup %7308 }
 0xdf5   :  { %v7311_v48 = vpop.eup %7310  ;;  %v4098_v50 = vmul.f32 %v7309_v44, %v7293_v25  ;;  %v4909_v44 = vld [vmem:[%s8256_s14 + $0x20] sm:$0xff] }
 0xdf6   :  { %v4097_v49 = vmul.f32 %v7311_v48, %v7295_v26  ;;  %v4910_v48 = vld [vmem:[%s8256_s14 + $0x28] sm:$0xff] }
 0xdf8   :  { %6608 = vmatprep.mubr.msk.f32.mxu1 %vm1670_vm4, %v4097_v49  ;;  %v7085_v49 = vpack.c.bf16 %v4910_v48, %v4909_v44  ;;  %v5134_v44 = vld [vmem:[%s8261_s15 + $0x28] sm:$0xff]  ;;  %v5151_v48 = vld [vmem:[%s8261_s15 + $0xb0] sm:$0xff] }
 0xdf9   :  { %6609 = vmatmul.mubr.msk.f32.vlgmr.msra.gmra.mrb[48].mxu1 %vm1670_vm4, %v4098_v50 }
 0xdfa   :  { %6617 = vmatpush3.msra.mxu1 %v4424_v53 }
 0xdfb   :  { %6626 = vmatprep.subr.mxu1 %v4426_v54 }
 0xeb3   :  { %v6589_v55 = vpop.f32.mrb[44].mxu1 }
 0xeb4   :  { %v4171_v46 = vpop.f32.mrb[45].mxu1 }
 0xeb5   :  { %6613 = vmatprep.mubr.msk.f32.mxu0 %vm1321_vm2, %v4171_v46 }
 0xeb6   :  { %6614 = vmatmul.mubr.msk.f32.vlgmr.msra.gmra.mrb[46].mxu0 %vm1321_vm2, %v6589_v55 }
 0xeb7   :  { %6622 = vmatpush3.msra.mxu0 %v4425_v52 }
 0xeb8   :  { %7070 = vmatprep.subr.bf16.mxu0 %v7069_v4 }
 0xebc   :  { %v6603_v56 = vpop.f32.mrb[44].mxu0 }
 0xebd   :  { %v4333_v57 = vpop.f32.mrb[45].mxu0 }
 0xebe   :  { %6623 = vmatprep.mubr.msk.f32.mxu0 %vm1321_vm2, %v4333_v57 }
 0xebf   :  { %6624 = vmatmul.mubr.msk.f32.vlgmr.msra.gmra.mrb[48].mxu0 %vm1321_vm2, %v6603_v56  ;;  %v5789_v56 = vld [vmem:[%s8257_s19] ss:$0 sm:$0xff] }
 0xec0   :  { %7072 = vmatpush3.bf16.msra.mxu0 %v7069_v4  ;;  %v5148_v4 = vld [vmem:[%s8261_s15 + $0x98] sm:$0xff] }
 0xec1   :  { %7074 = vmatprep.subr.bf16.mxu0 %v7073_v5  ;;  %v7097_v39 = vpack.c.bf16 %v5148_v4, %v5147_v37 }
 0xec4   :  { %v6596_v58 = vpop.f32.mrb[46].mxu1  ;;  %7076 = vmatpush3.bf16.msra.mxu0 %v7073_v5  ;;  %v5131_v5 = vld [vmem:[%s8261_s15 + $0x10] sm:$0xff] }
 0xec5   :  { %v4252_v59 = vpop.f32.mrb[47].mxu1 }
 0xec6   :  { %6618 = vmatprep.mubr.msk.f32.mxu1 %vm1321_vm2, %v4252_v59 }
 0xec7   :  { %6619 = vmatmul.mubr.msk.f32.vlgmr.msra.gmra.mrb[50].mxu1 %vm1321_vm2, %v6596_v58 }
 0xec8   :  { %6627 = vmatpush3.msra.mxu1 %v4426_v54 }
 0xec9   :  { %7078 = vmatprep.subr.bf16.mxu1 %v7077_v22 }
 0xecc   :  { %v6610_v60 = vpop.f32.mrb[48].mxu1 }
 0xecd   :  { %v4414_v63 = vpop.f32.mrb[49].mxu1 }
 0xece   :  { %6628 = vmatprep.mubr.msk.f32.mxu1 %vm1321_vm2, %v4414_v63 }
 0xecf   :  { %6629 = vmatmul.mubr.msk.f32.vlgmr.msra.gmra.mrb[52].mxu1 %vm1321_vm2, %v6610_v60  ;;  %v5790_v60 = vld [vmem:[%s8258_s24] ss:$0 sm:$0xff] }
 0xed0   :  { %7080 = vmatpush3.bf16.msra.mxu1 %v7077_v22  ;;  %v7099_v22 = vpack.c.bf16 %v5132_v40, %v5131_v5 }
 0xed1   :  { %7082 = vmatprep.subr.bf16.mxu1 %v7081_v43 }
 0xed4   :  { %7084 = vmatpush3.bf16.msra.mxu1 %v7081_v43  ;;  %v5133_v43 = vld [vmem:[%s8261_s15 + $0x20] sm:$0xff] }
 0xed5   :  { %7086 = vmatprep.subr.bf16.mxu1 %v7085_v49 }
 0xed8   :  { %7088 = vmatpush3.bf16.msra.mxu1 %v7085_v49  ;;  %v5152_v49 = vld [vmem:[%s8261_s15 + $0xb8] sm:$0xff] }
 0xf89   :  { %v6615_v0 = vpop.f32.mrb[46].mxu0 }
 0xf8a   :  { %v4499_v1 = vpop.f32.mrb[47].mxu0  ;;  %v4758_v9 = vsel %vm279_vm1, %v6615_v0, 0.0 }
 0xf8b   :  { %v4751_v12 = vsel %vm279_vm1, %v4499_v1, 0.0 }
 0xf92   :  { %v6625_v3 = vpop.f32.mrb[48].mxu0 }
 0xf93   :  { %v4661_v6 = vpop.f32.mrb[49].mxu0  ;;  %v4761_v15 = vsel %vm279_vm1, %v6625_v3, 0.0 }
 0xf94   :  { %v4754_v17 = vsel %vm279_vm1, %v4661_v6, 0.0  ;;  %v4911_v6 = vld [vmem:[%s8256_s14 + $0x30] sm:$0xff] }
 0xf9a   :  { %v6620_v8 = vpop.f32.mrb[50].mxu1 }
 0xf9b   :  { %v4759_v10 = vsel %vm279_vm1, %v6620_v8, 0.0  ;;  %v4580_v11 = vpop.f32.mrb[51].mxu1  ;;  %v4912_v8 = vld [vmem:[%s8256_s14 + $0x38] sm:$0xff] }
 0xf9c   :  { %v4760_v13 = vadd.f32 %v4759_v10, %v4758_v9  ;;  %v4752_v14 = vsel %vm279_vm1, %v4580_v11, 0.0  ;;  %v7089_v9 = vpack.c.bf16 %v4912_v8, %v4911_v6  ;;  %v5791_v10 = vld [vmem:[%s8259_s6] ss:$0 sm:$0xff]  ;;  %v5155_v8 = vld [vmem:[%s8261_s15 + $0xd0] sm:$0xff] }
 0xf9d   :  { %v4753_v16 = vadd.f32 %v4752_v14, %v4751_v12 }
 0xf9e   :  { %v4762_v18 = vadd.f32 %v4761_v15, %v4760_v13  ;;  %7090 = vmatprep.subr.bf16.mxu1 %v7089_v9 }
 0xf9f   :  { %v4755_v19 = vadd.f32 %v4754_v17, %v4753_v16  ;;  %7092 = vmatpush3.bf16.msra.mxu1 %v7089_v9  ;;  %v5794_v17 = vld [vmem:[%s8260_s20] ss:$0 sm:$0xff]  ;;  %v5156_v9 = vld [vmem:[%s8261_s15 + $0xd8] sm:$0xff] }
 0xfa2   :  { %v6630_v20 = vpop.f32.mrb[52].mxu1 }
 0xfa3   :  { %v4763_v21 = vsel %vm279_vm1, %v6630_v20, 0.0  ;;  %v4742_v23 = vpop.f32.mrb[53].mxu1 }
 0xfa4   :  { %v4764_v47 = vadd.f32 %v4763_v21, %v4762_v18  ;;  %v4756_v24 = vsel %vm279_vm1, %v4742_v23, 0.0 }
 0xfa5   :  { %v4757_v45 = vadd.f32 %v4756_v24, %v4755_v19 }
 0xfa6   :  { %v4766_v25 = vadd.f32 %v4764_v47, %v7876_v62 }
 0xfa7   :  { %v4765_v26 = vadd.f32 %v4757_v45, %v7874_v61 }
 0xfa8   :  { %v4772_v27 = vsel %vm279_vm1, %v4766_v25, 0.0 }
 0xfa9   :  { %4773 = vadd.xlane.f32.xlu1 %v4772_v27  ;;  %v4769_v28 = vsel %vm279_vm1, %v4765_v26, 0.0 }
 0xfaa   :  { %4770 = vadd.xlane.f32.xlu0 %v4769_v28 }
0x1036   :  { %v4774_v29 = vpop.xlane.xlu1 %4773 }
0x1037   :  { %v4776_v30 = vmul.f32 0.03125, %v4774_v29  ;;  %v4771_v31 = vpop.xlane.xlu0 %4770 }
0x1038   :  { %v4775_v32 = vmul.f32 0.03125, %v4771_v31 }
0x1039   :  { %v4778_v33 = vsub.f32 %v4766_v25, %v4776_v30 }
0x103a   :  { %v4777_v34 = vsub.f32 %v4765_v26, %v4775_v32 }
0x103b   :  { %v4780_v35 = vmul.f32 %v4778_v33, %v4778_v33 }
0x103c   :  { %v4779_v62 = vmul.f32 %v4777_v34, %v4777_v34 }
0x103d   :  { %v4784_v61 = vsel %vm279_vm1, %v4780_v35, 0.0  ;;  %v5145_v35 = vld [vmem:[%s8261_s15 + $0x80] sm:$0xff] }
0x103e   :  { %4785 = vadd.xlane.f32.xlu1 %v4784_v61  ;;  %v4781_v2 = vsel %vm279_vm1, %v4779_v62, 0.0  ;;  %v5146_v62 = vld [vmem:[%s8261_s15 + $0x88] sm:$0xff]  ;;  %v5129_v61 = vld [vmem:[%s8261_s15] sm:$0xff] }
0x103f   :  { %4782 = vadd.xlane.f32.xlu0 %v4781_v2  ;;  %v7093_v2 = vpack.c.bf16 %v5146_v62, %v5145_v35  ;;  %v7095_v38 = vpack.c.bf16 %v5130_v36, %v5129_v61  ;;  %v5160_v62 = vld [vmem:[%s8261_s15 + $0xf8] sm:$0xff]  ;;  %v5143_v61 = vld [vmem:[%s8261_s15 + $0x70] sm:$0xff] }
0x1041   :  { %7094 = vmatprep.subr.bf16.mxu0 %v7093_v2  ;;  %v5144_v2 = vld [vmem:[%s8261_s15 + $0x78] sm:$0xff] }
0x1042   :  { %v7123_v7 = vpack.c.bf16 %v5144_v2, %v5143_v61 }
0x10cb   :  { %v4786_v50 = vpop.xlane.xlu1 %4785 }
0x10cc   :  { %v4788_v51 = vmul.f32 0.03125, %v4786_v50  ;;  %v4783_v52 = vpop.xlane.xlu0 %4782  ;;  %v7103_v50 = vpack.c.bf16 %v5134_v44, %v5133_v43  ;;  %v5239_v43 = vld [vmem:[%s8264_s22] sm:$0xff]  ;;  %v5240_v44 = vld [vmem:[%s8264_s22 + $0x8] sm:$0xff] }
0x10cd   :  { %v4787_v53 = vmul.f32 0.03125, %v4783_v52  ;;  %v5135_v52 = vld [vmem:[%s8261_s15 + $0x30] sm:$0xff] }
0x10ce   :  { %v4790_v54 = vadd.f32 1e-06, %v4788_v51  ;;  %v7105_v51 = vpack.c.bf16 %v5152_v49, %v5151_v48  ;;  %v5241_v48 = vld [vmem:[%s8264_s22 + $0x10] sm:$0xff] }
0x10cf   :  { %v4789_v55 = vadd.f32 1e-06, %v4787_v53  ;;  %v5136_v53 = vld [vmem:[%s8261_s15 + $0x38] sm:$0xff] }
0x10d0   :  { %7312 = vrsqrt.f32 %v4790_v54  ;;  %v5153_v54 = vld [vmem:[%s8261_s15 + $0xc0] sm:$0xff] }
0x10d1   :  { %7314 = vrsqrt.f32 %v4789_v55  ;;  %v5154_v55 = vld [vmem:[%s8261_s15 + $0xc8] sm:$0xff] }
0x10da   :  { %v7313_v46 = vpop.eup %7312 }
0x10db   :  { %v7315_v57 = vpop.eup %7314  ;;  %v4794_v58 = vmul.f32 %v7313_v46, %v4778_v33  ;;  %v7107_v46 = vpack.c.bf16 %v5136_v53, %v5135_v52  ;;  %v7389_v52 = vmov 0.0|0.0   ;;  %v7126_v53 = vpack.c.bf16 %v5240_v44, %v5239_v43 }
0x10dc   :  { %v4793_v59 = vmul.f32 %v7315_v57, %v4777_v34  ;;  %v5137_v57 = vld [vmem:[%s8261_s15 + $0x40] sm:$0xff]  ;;  %7125 = vmatprep.subr.bf16.mxu1 %v7389_v52 }
0x10dd   :  { %v4802_v63 = vmul.f32 %v5789_v56, %v4794_v58  ;;  %v5138_v58 = vld [vmem:[%s8261_s15 + $0x48] sm:$0xff] }
0x10de   :  { %v4801_v0 = vmul.f32 %v5789_v56, %v4793_v59  ;;  %v7109_v56 = vpack.c.bf16 %v5154_v55, %v5153_v54  ;;  %v7111_v59 = vpack.c.bf16 %v5138_v58, %v5137_v57  ;;  %v5242_v54 = vld [vmem:[%s8264_s22 + $0x18] sm:$0xff] }
0x10df   :  { %v4810_v3 = vadd.f32 %v5790_v60, %v4802_v63  ;;  %v7129_v55 = vpack.c.bf16 %v5242_v54, %v5241_v48  ;;  %v5420_v48 = vld [vmem:[%s8268_s7 + $0x10] sm:$0xff] }
0x10e0   :  { %v4809_v1 = vadd.f32 %v5790_v60, %v4801_v0 }
0x10e2   :  { %6639 = vmatprep.mubr.msk.f32.mxu0 %vm279_vm1, %v4809_v1 }
0x10e3   :  { %6640 = vmatmul.mubr.msk.f32.vlgmr.msra.gmra.mrb[50].mxu0 %vm279_vm1, %v4810_v3 }
0x10e4   :  { %7096 = vmatpush3.bf16.msra.mxu0 %v7095_v38 }
0x10e5   :  { %7098 = vmatprep.subr.bf16.mxu0 %v7097_v39 }
0x10e8   :  { %7100 = vmatpush3.bf16.msra.mxu0 %v7099_v22 }
0x10e9   :  { %7102 = vmatprep.subr.bf16.mxu0 %v7101_v42 }
0x10ec   :  { %7104 = vmatpush3.bf16.msra.mxu0 %v7103_v50 }
0x10ed   :  { %7106 = vmatprep.subr.bf16.mxu0 %v7105_v51 }
0x10f0   :  { %7108 = vmatpush3.bf16.msra.mxu0 %v7107_v46  ;;  %v5243_v46 = vld [vmem:[%s8264_s22 + $0x20] sm:$0xff] }
0x10f1   :  { %7110 = vmatprep.subr.bf16.mxu0 %v7109_v56  ;;  %v5244_v56 = vld [vmem:[%s8264_s22 + $0x28] sm:$0xff] }
0x10f4   :  { %7112 = vmatpush3.bf16.msra.mxu0 %v7111_v59 }
0x11b6   :  { %v6641_v11 = vpop.f32.mrb[50].mxu0 }
0x11b7   :  { %v4900_v12 = vadd.f32 %v6641_v11, %v5791_v10  ;;  %v4894_v13 = vpop.f32.mrb[51].mxu0  ;;  %v7113_v11 = vpack.c.bf16 %v5156_v9, %v5155_v8  ;;  %v5248_v8 = vld [vmem:[%s8264_s22 + $0x48] sm:$0xff] }
0x11b8   :  { %v4895_v14 = vadd.f32 %v5791_v10, %v4894_v13  ;;  %v5139_v10 = vld [vmem:[%s8261_s15 + $0x50] sm:$0xff] }
0x11b9   :  { %v4904_v16 = vmax.f32 %v4900_v12, 0.0  ;;  %v5140_v12 = vld [vmem:[%s8261_s15 + $0x58] sm:$0xff]  ;;  %7114 = vmatprep.subr.bf16.mxu0 %v7113_v11 }
0x11ba   :  { %v4903_v15 = vmax.f32 %v4895_v14, 0.0  ;;  %v5797_v14 = vld [vmem:[%s8262_s16] ss:$0 sm:$0xff]  ;;  %v5250_v11 = vld [vmem:[%s8264_s22 + $0x58] sm:$0xff] }
0x11bc   :  { %6658 = vmatprep.mubr.msk.f32.mxu1 %vm2581_vm5, %v4903_v15  ;;  %v7115_v15 = vpack.c.bf16 %v5140_v12, %v5139_v10  ;;  %v5249_v10 = vld [vmem:[%s8264_s22 + $0x50] sm:$0xff] }
0x11bd   :  { %6659 = vmatmul.mubr.msk.f32.vlgmr.msra.gmra.mrb[54].mxu1 %vm2581_vm5, %v4904_v16  ;;  %v7141_v12 = vpack.c.bf16 %v5250_v11, %v5249_v10  ;;  %v5512_v11 = vld [vmem:[%s7598_s30] sm:$0xff] }
0x11be   :  { %7116 = vmatpush3.bf16.msra.mxu0 %v7115_v15  ;;  %7127 = vmatpush3.bf16.msra.mxu1 %v7126_v53  ;;  %v5423_v53 = vld [vmem:[%s8268_s7 + $0x28] sm:$0xff] }
0x11bf   :  { %7128 = vmatprep.subr.bf16.mxu1 %v7389_v52 }
0x11c2   :  { %7130 = vmatpush3.bf16.msra.mxu1 %v7129_v55  ;;  %v5424_v55 = vld [vmem:[%s8268_s7 + $0x30] sm:$0xff] }
0x11c3   :  { %7131 = vmatprep.subr.bf16.mxu1 %v7389_v52 }
0x1290   :  { %v6660_v18 = vpop.f32.mrb[54].mxu1 }
0x1291   :  { %v4998_v19 = vadd.f32 %v6660_v18, %v5794_v17  ;;  %v4992_v20 = vpop.f32.mrb[55].mxu1 }
0x1292   :  { %v4993_v21 = vadd.f32 %v5794_v17, %v4992_v20  ;;  %v5798_v17 = vld [vmem:[%s8263_s18] ss:$0 sm:$0xff] }
0x1293   :  { %v5002_v23 = vadd.f32 %v4998_v19, %v4810_v3  ;;  %v5157_v20 = vld [vmem:[%s8261_s15 + $0xe0] sm:$0xff] }
0x1294   :  { %v5001_v47 = vadd.f32 %v4993_v21, %v4809_v1  ;;  %v5158_v21 = vld [vmem:[%s8261_s15 + $0xe8] sm:$0xff] }
0x1295   :  { %v5008_v24 = vsel %vm279_vm1, %v5002_v23, 0.0 }
0x1296   :  { %5009 = vadd.xlane.f32.xlu1 %v5008_v24  ;;  %v5005_v45 = vsel %vm279_vm1, %v5001_v47, 0.0  ;;  %v7117_v24 = vpack.c.bf16 %v5158_v21, %v5157_v20 }
0x1297   :  { %5006 = vadd.xlane.f32.xlu0 %v5005_v45  ;;  %v5142_v45 = vld [vmem:[%s8261_s15 + $0x68] sm:$0xff] }
0x1298   :  { %7118 = vmatprep.subr.bf16.mxu0 %v7117_v24 }
0x1323   :  { %v5010_v25 = vpop.xlane.xlu1 %5009 }
0x1324   :  { %v5012_v26 = vmul.f32 0.03125, %v5010_v25  ;;  %v5007_v27 = vpop.xlane.xlu0 %5006 }
0x1325   :  { %v5011_v28 = vmul.f32 0.03125, %v5007_v27 }
0x1326   :  { %v8068_v29 = vsub.f32 %v5002_v23, %v5012_v26  ;;  %v5141_v23 = vld [vmem:[%s8261_s15 + $0x60] sm:$0xff] }
0x1327   :  { %v8070_v30 = vsub.f32 %v5001_v47, %v5011_v28  ;;  %v7119_v26 = vpack.c.bf16 %v5142_v45, %v5141_v23 }
0x1328   :  { %v5016_v31 = vmul.f32 %v8068_v29, %v8068_v29 }
0x1329   :  { %v5015_v32 = vmul.f32 %v8070_v30, %v8070_v30  ;;  %7120 = vmatpush3.bf16.msra.mxu0 %v7119_v26  ;;  %v5252_v26 = vld [vmem:[%s8264_s22 + $0x68] sm:$0xff] }
0x132a   :  { %v5020_v33 = vsel %vm279_vm1, %v5016_v31, 0.0 }
0x132b   :  { %5021 = vadd.xlane.f32.xlu1 %v5020_v33  ;;  %v5017_v34 = vsel %vm279_vm1, %v5015_v32, 0.0  ;;  %v5159_v32 = vld [vmem:[%s8261_s15 + $0xf0] sm:$0xff] }
0x132c   :  { %5018 = vadd.xlane.f32.xlu0 %v5017_v34  ;;  %v7121_v40 = vpack.c.bf16 %v5160_v62, %v5159_v32  ;;  %v5333_v32 = vld [vmem:[%s8265_s1] sm:$0xff] }
0x132d   :  { %v5800_v62 = vld [vmem:[%s8266_s2] ss:$0 sm:$0xff] }
0x132e   :  { %7122 = vmatprep.subr.bf16.mxu0 %v7121_v40  ;;  %v5418_v40 = vld [vmem:[%s8268_s7] sm:$0xff] }
0x132f   :  { %7124 = vmatpush3.bf16.msra.mxu0 %v7123_v7  ;;  %v5419_v7 = vld [vmem:[%s8268_s7 + $0x8] sm:$0xff] }
0x1330   :  { %7149 = vmatprep.subr.bf16.mxu0 %v7389_v52  ;;  %v7156_v43 = vpack.c.bf16 %v5419_v7, %v5418_v40 }
0x13b8   :  { %v5022_v60 = vpop.xlane.xlu1 %5021 }
0x13b9   :  { %v5024_v63 = vmul.f32 0.03125, %v5022_v60  ;;  %v5019_v0 = vpop.xlane.xlu0 %5018  ;;  %v7132_v60 = vpack.c.bf16 %v5244_v56, %v5243_v46  ;;  %v5425_v46 = vld [vmem:[%s8268_s7 + $0x38] sm:$0xff] }
0x13ba   :  { %v5023_v1 = vmul.f32 0.03125, %v5019_v0  ;;  %v5246_v0 = vld [vmem:[%s8264_s22 + $0x38] sm:$0xff]  ;;  %v7165_v56 = vpack.c.bf16 %v5425_v46, %v5424_v55 }
0x13bb   :  { %v5026_v3 = vadd.f32 1e-06, %v5024_v63  ;;  %v5245_v63 = vld [vmem:[%s8264_s22 + $0x30] sm:$0xff]  ;;  %7133 = vmatpush3.bf16.msra.mxu1 %v7132_v60 }
0x13bc   :  { %v5025_v6 = vadd.f32 1e-06, %v5023_v1  ;;  %7134 = vmatprep.subr.bf16.mxu1 %v7389_v52  ;;  %v5428_v60 = vld [vmem:[%s8268_s7 + $0x50] sm:$0xff] }
0x13bd   :  { %7316 = vrsqrt.f32 %v5026_v3  ;;  %v7135_v3 = vpack.c.bf16 %v5246_v0, %v5245_v63  ;;  %v5429_v63 = vld [vmem:[%s8268_s7 + $0x58] sm:$0xff] }
0x13be   :  { %7318 = vrsqrt.f32 %v5025_v6  ;;  %v5247_v6 = vld [vmem:[%s8264_s22 + $0x40] sm:$0xff]  ;;  %v7171_v0 = vpack.c.bf16 %v5429_v63, %v5428_v60 }
0x13bf   :  { %7136 = vmatpush3.bf16.msra.mxu1 %v7135_v3  ;;  %v7138_v9 = vpack.c.bf16 %v5248_v8, %v5247_v6  ;;  %v5431_v3 = vld [vmem:[%s8268_s7 + $0x68] sm:$0xff]  ;;  %v5432_v8 = vld [vmem:[%s8268_s7 + $0x70] sm:$0xff] }
0x13c0   :  { %7137 = vmatprep.subr.bf16.mxu1 %v7389_v52 }
0x13c3   :  { %7139 = vmatpush3.bf16.msra.mxu1 %v7138_v9  ;;  %v5433_v9 = vld [vmem:[%s8268_s7 + $0x78] sm:$0xff] }
0x13c4   :  { %7140 = vmatprep.subr.bf16.mxu1 %v7389_v52  ;;  %v7177_v10 = vpack.c.bf16 %v5433_v9, %v5432_v8 }
0x13c7   :  { %v7317_v13 = vpop.eup %7316  ;;  %7142 = vmatpush3.bf16.msra.mxu1 %v7141_v12  ;;  %v5513_v12 = vld [vmem:[%s7598_s30 + $0x8] sm:$0xff] }
0x13c8   :  { %v7319_v16 = vpop.eup %7318  ;;  %v5030_v18 = vmul.f32 %v7317_v13, %v8068_v29  ;;  %7143 = vmatprep.subr.bf16.mxu1 %v7389_v52 }
0x13c9   :  { %v5029_v19 = vmul.f32 %v7319_v16, %v8070_v30 }
0x13ca   :  { %v5038_v47 = vmul.f32 %v5797_v14, %v5030_v18 }
0x13cb   :  { %v5037_v25 = vmul.f32 %v5797_v14, %v5029_v19 }
0x13cc   :  { %v5046_v27 = vadd.f32 %v5798_v17, %v5038_v47 }
0x13cd   :  { %v5045_v28 = vadd.f32 %v5798_v17, %v5037_v25  ;;  %v5251_v25 = vld [vmem:[%s8264_s22 + $0x60] sm:$0xff] }
0x13ce   :  { %v5073_v29 = vrot.slane %v5046_v27, 4  ;;  %v5083_v33 = vrot.slane %v5046_v27, 6  ;;  %v5078_v34 = vrot.slane %v5046_v27, 5  ;;  %v5068_v35 = vrot.slane %v5046_v27, 3 }
0x13cf   :  { %v5071_v30 = vrot.slane %v5045_v28, 5  ;;  %v5053_v31 = vrot.slane %v5045_v28, 1  ;;  %v5081_v4 = vrot.slane %v5045_v28, 7  ;;  %v5076_v38 = vrot.slane %v5045_v28, 6 }
0x13d0   :  { %v5066_v39 = vrot.slane %v5045_v28, 4  ;;  %v5048_v5 = vrot.slane %v5046_v27, 7  ;;  %v5058_v41 = vrot.slane %v5046_v27, 1  ;;  %v5056_v51 = vrot.slane %v5045_v28, 2 }
0x13d1   :  { %v5075_v36 = vsel %vm5050_vm6, %v5071_v30, %v5073_v29  ;;  %v5055_v37 = vsel %vm5050_vm6, %v5053_v31, %v5046_v27  ;;  %v5085_v49 = vsel %vm5050_vm6, %v5081_v4, %v5083_v33  ;;  %v5080_v50 = vsel %vm5050_vm6, %v5076_v38, %v5078_v34  ;;  %v5254_v29 = vld [vmem:[%s8264_s22 + $0x78] sm:$0xff]  ;;  %v5334_v33 = vld [vmem:[%s8265_s1 + $0x8] sm:$0xff]  ;;  %v5335_v4 = vld [vmem:[%s8265_s1 + $0x10] sm:$0xff] }
0x13d2   :  { %5099 = vrot.lane.b32.xlu0 %v5075_v36, %s7388_s23  ;;  %5087 = vrot.lane.b32.xlu1 %v5055_v37, %s7388_s23  ;;  %v5070_v22 = vsel %vm5050_vm6, %v5066_v39, %v5068_v35  ;;  %v5051_v42 = vsel %vm5050_vm6, %v5045_v28, %v5048_v5  ;;  %v5060_v57 = vsel %vm5050_vm6, %v5056_v51, %v5058_v41  ;;  %v5061_v58 = vrot.slane %v5045_v28, 3  ;;  %v5253_v28 = vld [vmem:[%s8264_s22 + $0x70] sm:$0xff]  ;;  %v5336_v38 = vld [vmem:[%s8265_s1 + $0x18] sm:$0xff] }
0x13d3   :  { %v5063_v59 = vrot.slane %v5046_v27, 2  ;;  %v7144_v27 = vpack.c.bf16 %v5252_v26, %v5251_v25  ;;  %v7147_v30 = vpack.c.bf16 %v5254_v29, %v5253_v28  ;;  %v7393_v31 = vmov 0.0   ;;  %v5422_v51 = vld [vmem:[%s8268_s7 + $0x20] sm:$0xff]  ;;  %v5519_v25 = vld [vmem:[%s7598_s30 + $0x38] sm:$0xff] }
0x13d4   :  { %6693 = vmatprep.mubr.msk.f32.mxu1 %vm7392_vm8, %v7393_v31  ;;  %v7150_v34 = vpack.c.bf16 %v5334_v33, %v5333_v32  ;;  %v7153_v39 = vpack.c.bf16 %v5336_v38, %v5335_v4  ;;  %v7162_v54 = vpack.c.bf16 %v5423_v53, %v5422_v51  ;;  %v5805_v32 = vld [vmem:[%s7603_s27] ss:$0 sm:$0xff] }
0x13d5   :  { %v5065_v1 = vsel %vm5050_vm6, %v5061_v58, %v5063_v59  ;;  %7145 = vmatpush3.bf16.msra.mxu1 %v7144_v27  ;;  %v5427_v58 = vld [vmem:[%s8268_s7 + $0x48] sm:$0xff]  ;;  %v5804_v27 = vld [vmem:[%s8270_s11] ss:$0 sm:$0xff] }
0x13d6   :  { %5107 = vrot.lane.b32.xlu0 %v5085_v49, %s7390_s26  ;;  %5103 = vrot.lane.b32.xlu1 %v5080_v50, %s7391_s28  ;;  %v5421_v49 = vld [vmem:[%s8268_s7 + $0x18] sm:$0xff] }
0x13d7   :  { %7146 = vmatprep.subr.bf16.mxu1 %v7389_v52  ;;  %v7159_v50 = vpack.c.bf16 %v5421_v49, %v5420_v48 }
0x13d9   :  { %7148 = vmatpush3.bf16.msra.mxu1 %v7147_v30 }
0x13da   :  { %5091 = vrot.lane.b32.xlu1 %v5060_v57, %s7391_s28  ;;  %7179 = vmatprep.subr.bf16.mxu1 %v7389_v52  ;;  %v5426_v57 = vld [vmem:[%s8268_s7 + $0x40] sm:$0xff] }
0x13db   :  { %v7168_v59 = vpack.c.bf16 %v5427_v58, %v5426_v57 }
0x13de   :  { %5095 = vrot.lane.b32.xlu1 %v5065_v1, %s7390_s26  ;;  %v5430_v1 = vld [vmem:[%s8268_s7 + $0x60] sm:$0xff] }
0x13df   :  { %v7174_v6 = vpack.c.bf16 %v5431_v3, %v5430_v1 }
0x1444   :  { %v5100_v13 = vpop.permute.xlu0 %5099  ;;  %v5088_v14 = vpop.permute.xlu1 %5087 }
0x1445   :  { %v5114_v15 = vsel %vm279_vm1, %v5070_v22, %v5100_v13  ;;  %v5110_v21 = vsel %vm279_vm1, %v5051_v42, %v5088_v14  ;;  %v5514_v13 = vld [vmem:[%s7598_s30 + $0x10] sm:$0xff]  ;;  %v7180_v14 = vpack.c.bf16 %v5513_v12, %v5512_v11 }
0x1448   :  { %v5108_v16 = vpop.permute.xlu0 %5107  ;;  %v5104_v17 = vpop.permute.xlu1 %5103 }
0x1449   :  { %v5115_v18 = vsel %vm2581_vm5, %v5114_v15, %v5104_v17  ;;  %v5515_v15 = vld [vmem:[%s7598_s30 + $0x18] sm:$0xff]  ;;  %v5516_v17 = vld [vmem:[%s7598_s30 + $0x20] sm:$0xff] }
0x144a   :  { %v5116_v19 = vsel %vm5112_vm7, %v5115_v18, %v5108_v16  ;;  %v7183_v16 = vpack.c.bf16 %v5515_v15, %v5514_v13  ;;  %v5517_v18 = vld [vmem:[%s7598_s30 + $0x28] sm:$0xff] }
0x144b   :  { %5232 = vmatprep.mubr.f32.mxu0 %v5116_v19 }
0x144c   :  { %v5092_v20 = vpop.permute.xlu1 %5091 }
0x144d   :  { %v5111_v23 = vsel %vm2581_vm5, %v5110_v21, %v5092_v20  ;;  %v5802_v20 = vld [vmem:[%s8269_s10] ss:$0 sm:$0xff] }
0x1450   :  { %v5096_v47 = vpop.permute.xlu1 %5095 }
0x1451   :  { %v5113_v24 = vsel %vm5112_vm7, %v5111_v23, %v5096_v47 }
0x1452   :  { %v5119_v45 = vcombine.low %v5113_v24, %v5116_v19  ;;  %5233 = vmatmul.mubr.f32.vlgmr.msra.gmra.mrb[52].mxu0 %v5113_v24  ;;  %v7186_v19 = vpack.c.bf16 %v5517_v18, %v5516_v17 }
0x1453   :  { %6704 = vmatprep.mubr.msk.f32.mxu0 %vm7392_vm8, %v7393_v31  ;;  %7151 = vmatpush3.bf16.msra.mxu0 %v7150_v34 }
0x1454   :  { %5799 = vst.sshfl [vmem:[%s7608_s4] sm:$0x33 pattern:$0x76325410] %v5119_v45  ;;  %s8267_s4 = sld [smem:[#allocation25_spill]]  ;;  %7152 = vmatprep.subr.bf16.mxu0 %v7389_v52  ;;  %v5518_v45 = vld [vmem:[%s7598_s30 + $0x30] sm:$0xff] }
0x1455   :  { %v7189_v26 = vpack.c.bf16 %v5519_v25, %v5518_v45 }
0x1457   :  { %7154 = vmatpush3.bf16.msra.mxu0 %v7153_v39 }
0x1458   :  { %7155 = vmatprep.subr.bf16.mxu0 %v7389_v52 }
0x145a   :  { %v5801_v5 = vld [vmem:[%s8267_s4] ss:$0 sm:$0xff] }
0x1525   :  { %v6114_v35 = vpop.f32.mrb[52].mxu0 }
0x1526   :  { %v6115_v61 = vpop.f32.mrb[53].mxu0 }
0x1527   :  { %v6116_v2 = vadd.f32 %v6115_v61, %v6114_v35 }
0x1529   :  { %v5235_v36 = vadd.f32 %v6116_v2, %v5800_v62 }
0x152b   :  { %v5238_v37 = vmax.f32 %v5235_v36, 0.0 }
0x152d   :  { %6694 = vmatmul.mubr.f32.vlgmr.msra.gmra.mrb[56].mxu1 %v5238_v37 }
0x152e   :  { %6758 = vmatprep.mubr.msk.f32.mxu1 %vm7392_vm8, %v7393_v31  ;;  %7181 = vmatpush3.bf16.msra.mxu1 %v7180_v14 }
0x152f   :  { %7182 = vmatprep.subr.bf16.mxu1 %v7389_v52 }
0x1532   :  { %7184 = vmatpush3.bf16.msra.mxu1 %v7183_v16 }
0x1533   :  { %7185 = vmatprep.subr.bf16.mxu1 %v7389_v52 }
0x1536   :  { %7187 = vmatpush3.bf16.msra.mxu1 %v7186_v19 }
0x1537   :  { %7188 = vmatprep.subr.bf16.mxu1 %v7389_v52 }
0x153a   :  { %7190 = vmatpush3.bf16.msra.mxu1 %v7189_v26 }
0x1600   :  { %v5328_v41 = vpop.f32.mrb[56].mxu1 }
0x1601   :  { %v5329_v22 = vadd.f32 %v5801_v5, %v5328_v41  ;;  %v6695_v42 = vpop.f32.mrb[57].mxu1 }
0x1603   :  { %v5332_v44 = vmax.f32 %v5329_v22, 0.0 }
0x1605   :  { %6705 = vmatmul.mubr.msk.f32.vlgmr.msra.gmra.mrb[54].mxu0 %vm279_vm1, %v5332_v44 }
0x1606   :  { %7157 = vmatpush3.bf16.msra.mxu0 %v7156_v43  ;;  %6739 = vmatprep.mubr.msk.f32.mxu0 %vm7392_vm8, %v7393_v31 }
0x1607   :  { %7158 = vmatprep.subr.bf16.mxu0 %v7389_v52 }
0x160a   :  { %7160 = vmatpush3.bf16.msra.mxu0 %v7159_v50 }
0x160b   :  { %7161 = vmatprep.subr.bf16.mxu0 %v7389_v52 }
0x160e   :  { %7163 = vmatpush3.bf16.msra.mxu0 %v7162_v54 }
0x160f   :  { %7164 = vmatprep.subr.bf16.mxu0 %v7389_v52 }
0x1612   :  { %7166 = vmatpush3.bf16.msra.mxu0 %v7165_v56 }
0x1613   :  { %7167 = vmatprep.subr.bf16.mxu0 %v7389_v52 }
0x1616   :  { %7169 = vmatpush3.bf16.msra.mxu0 %v7168_v59 }
0x1617   :  { %7170 = vmatprep.subr.bf16.mxu0 %v7389_v52 }
0x161a   :  { %7172 = vmatpush3.bf16.msra.mxu0 %v7171_v0 }
0x161b   :  { %7173 = vmatprep.subr.bf16.mxu0 %v7389_v52 }
0x161e   :  { %7175 = vmatpush3.bf16.msra.mxu0 %v7174_v6 }
0x161f   :  { %7176 = vmatprep.subr.bf16.mxu0 %v7389_v52 }
0x1622   :  { %7178 = vmatpush3.bf16.msra.mxu0 %v7177_v10 }
0x16d8   :  { %v5413_v21 = vpop.f32.mrb[54].mxu0 }
0x16d9   :  { %v5414_v23 = vadd.f32 %v5802_v20, %v5413_v21  ;;  %v6706_v47 = vpop.f32.mrb[55].mxu0 }
0x16db   :  { %v5417_v24 = vmax.f32 %v5414_v23, 0.0 }
0x16dd   :  { %6740 = vmatmul.mubr.f32.vlgmr.msra.gmra.mrb[56].mxu0 %v5417_v24 }
0x17b0   :  { %v5507_v28 = vpop.f32.mrb[56].mxu0 }
0x17b1   :  { %v5508_v29 = vadd.f32 %v5804_v27, %v5507_v28  ;;  %v6741_v30 = vpop.f32.mrb[57].mxu0 }
0x17b3   :  { %v5511_v31 = vmax.f32 %v5508_v29, 0.0 }
0x17b5   :  { %6759 = vmatmul.mubr.msk.f32.vlgmr.msra.gmra.mrb[58].mxu1 %vm2581_vm5, %v5511_v31 }
0x1888   :  { %v5596_v52 = vpop.f32.mrb[58].mxu1 }
0x1889   :  { %v5597_v33 = vadd.f32 %v5805_v32, %v5596_v52  ;;  %v6760_v34 = vpop.f32.mrb[59].mxu1 }
0x188b   :  { %5600 = vst [vmem:[#allocation2] sm:$0x3] %v5597_v33 }
0x188c   :  { %7333 = shalt.err (!%p7330_p4)
}
0x188d   :  { %s7334_s30 = scalar_lea.hbm %s7613_s12, 32 }
0x188e   :  { %p7335_p5 = scmp.ne.s32.totalorder %s7613_s12, %s7334_s30  ;;  %p7338_p6 = scmp.lt.u32.totalorder %s7334_s30, %s7613_s12 }
0x1890   :  { %p7340_p7 = pnand %p7338_p6, %p7335_p5 }
0x1892   :  { %7343 = shalt.err (!%p7340_p7)
}
0x1893   :  { %5612 = dma.vmem_to_hbm [thread:$0]  %s5610_s5, 32, %s7613_s12, [#allocation3]  }
0x1894   :  { %7344 = dma.done.wait [#allocation3], 32  }
0x1895   :  { %7345 = vsyncadd [#allocation3], 4294967264 }
0x1896   :  { %5618 = vsyncpa [#allocation3], 1 }

</bundles_post_ra>
